<compile_context>
chip_gen: v5e
topology: v5e:2x2
jax: 0.10.0
libtpu: 0.0.40
codegen_flags: <defaults>
</compile_context>

<pallas_src>
import functools

import jax
import jax.numpy as jnp
from jax.experimental import pallas as pl
from jax.experimental.pallas import tpu as pltpu


# ----------------------------------------------------------------------------
# helpers
# ----------------------------------------------------------------------------
def _bilinear_matrix(out_size: int, in_size: int) -> jnp.ndarray:
    """1-D linear interpolation matrix, PyTorch align_corners=True semantics."""
    o = jnp.arange(out_size, dtype=jnp.float32)
    if out_size > 1:
        src = o * (in_size - 1) / (out_size - 1)
    else:
        src = jnp.zeros_like(o)
    lo = jnp.clip(jnp.floor(src).astype(jnp.int32), 0, in_size - 1)
    hi = jnp.clip(lo + 1, 0, in_size - 1)
    frac = src - lo.astype(jnp.float32)
    rows = jnp.arange(out_size)
    m = jnp.zeros((out_size, in_size), jnp.float32)
    m = m.at[rows, lo].add(1.0 - frac)
    m = m.at[rows, hi].add(frac)
    return m


# ----------------------------------------------------------------------------
# fused Up kernel: upsample+pad (matmul) -> concat -> conv+BN+ReLU -> conv+BN+ReLU
# ----------------------------------------------------------------------------
def _up_fused_kernel(x1_ref, x2_ref, ut_ref, w1_ref, s1_ref, w2_ref, s2_ref,
                     o_ref, cat_ref, *, H, W, halo):
    C1 = x1_ref.shape[1]
    C2 = x2_ref.shape[1]
    Cin1 = C1 + C2
    HW = H * W

    # Zero the haloed scratch: the zero halo is the conv's h-boundary padding.
    cat_ref[...] = jnp.zeros(cat_ref.shape, jnp.float32)

    # 1) bilinear 2x upsample + F.pad of x1: one lane-dense MXU matmul.
    x1u = jnp.dot(x1_ref[0].astype(jnp.float32), ut_ref[...],
                  preferred_element_type=jnp.float32)            # (C1, HW)

    # 2) channel concat [x2, x1u] into the scratch interior (lane offset=halo).
    cat_ref[0:C2, halo:halo + HW] = x2_ref[0].astype(jnp.float32)
    cat_ref[C2:Cin1, halo:halo + HW] = x1u

    # Per-lane masks for the w (intra-row) boundary of the 3x3 window.
    w_idx = jax.lax.broadcasted_iota(jnp.int32, (1, HW), 1) % W
    valid_left = w_idx > 0            # tap reads column (w - 1)
    valid_right = w_idx < (W - 1)     # tap reads column (w + 1)

    def conv3x3_bn_relu(cin, w_ref, s_ref):
        cout = w_ref.shape[2]
        # BN shift pre-loads the accumulator; BN scale is folded into w_ref.
        acc = jnp.broadcast_to(s_ref[...].astype(jnp.float32), (cout, HW))
        for kh in range(3):
            for kw in range(3):
                dh, dw = kh - 1, kw - 1
                off = halo + dh * W + dw
                patch = cat_ref[0:cin, off:off + HW]             # (cin, HW)
                contrib = jnp.dot(w_ref[kh, kw], patch,
                                  preferred_element_type=jnp.float32)
                if dw == -1:
                    contrib = jnp.where(valid_left, contrib, 0.0)
                elif dw == 1:
                    contrib = jnp.where(valid_right, contrib, 0.0)
                acc = acc + contrib
        return jnp.maximum(acc, 0.0)

    # 3) DoubleConv part 1: conv3x3(Cin1 -> Cmid) + BN + ReLU
    y1 = conv3x3_bn_relu(Cin1, w1_ref, s1_ref)                   # (Cmid, HW)

    # Reuse rows [0:Cmid] of the scratch (halo columns are still zero).
    cmid = w1_ref.shape[2]
    cat_ref[0:cmid, halo:halo + HW] = y1

    # 4) DoubleConv part 2: conv3x3(Cmid -> Cout) + BN + ReLU
    y2 = conv3x3_bn_relu(cmid, w2_ref, s2_ref)                   # (Cout, HW)

    o_ref[0] = y2.astype(o_ref.dtype)


def up_forward(x1_nchw, x2_nchw, params):
    N, C1, h, w = x1_nchw.shape
    _, C2, H, W = x2_nchw.shape
    HW, HW1 = H * W, h * w
    Cin1 = C1 + C2

    w1 = params["w1"]            # (Cmid, Cin1, 3, 3)  OIHW (PyTorch layout)
    w2 = params["w2"]            # (Cout, Cmid, 3, 3)
    Cmid, Cout = w1.shape[0], w2.shape[0]

    # --- upsample (+ F.pad to x2's size) folded into one constant matrix ----
    uh = _bilinear_matrix(2 * h, h)                              # (2h, h)
    uw = _bilinear_matrix(2 * w, w)                              # (2w, w)
    dy, dx = H - 2 * h, W - 2 * w
    uh_p = jnp.pad(uh, ((dy // 2, dy - dy // 2), (0, 0)))        # (H, h)
    uw_p = jnp.pad(uw, ((dx // 2, dx - dx // 2), (0, 0)))        # (W, w)
    ut = jnp.kron(uh_p, uw_p).T.astype(jnp.float32)              # (h*w, H*W)

    # --- fold BN scale into conv weights; layout (3, 3, Cout, Cin) ----------
    w1f = jnp.transpose(params["scale1"][:, None, None, None] * w1, (2, 3, 0, 1))
    w2f = jnp.transpose(params["scale2"][:, None, None, None] * w2, (2, 3, 0, 1))
    s1 = params["shift1"].reshape(Cmid, 1).astype(jnp.float32)
    s2 = params["shift2"].reshape(Cout, 1).astype(jnp.float32)

    # Channel-major / spatial-flat layouts (contiguous reshapes, no copies).
    x1_flat = x1_nchw.reshape(N, C1, HW1)
    x2_flat = x2_nchw.reshape(N, C2, HW)

    halo = ((W // 128) + 1) * 128          # aligned halo, >= W + 1

    kernel = functools.partial(_up_fused_kernel, H=H, W=W, halo=halo)

    out_flat = pl.pallas_call(
        kernel,
        out_shape=jax.ShapeDtypeStruct((N, Cout, HW), x2_nchw.dtype),
        grid=(N,),
        in_specs=[
            pl.BlockSpec((1, C1, HW1), lambda n: (n, 0, 0)),
            pl.BlockSpec((1, C2, HW), lambda n: (n, 0, 0)),
            pl.BlockSpec((HW1, HW), lambda n: (0, 0)),
            pl.BlockSpec((3, 3, Cmid, Cin1), lambda n: (0, 0, 0, 0)),
            pl.BlockSpec((Cmid, 1), lambda n: (0, 0)),
            pl.BlockSpec((3, 3, Cout, Cmid), lambda n: (0, 0, 0, 0)),
            pl.BlockSpec((Cout, 1), lambda n: (0, 0)),
        ],
        out_specs=pl.BlockSpec((1, Cout, HW), lambda n: (n, 0, 0)),
        scratch_shapes=[pltpu.VMEM((Cin1, HW + 2 * halo), jnp.float32)],
        compiler_params=pltpu.CompilerParams(
            dimension_semantics=("parallel",)),
    )(x1_flat, x2_flat, ut, w1f, s1, w2f, s2)

    return out_flat.reshape(N, Cout, H, W)


# ----------------------------------------------------------------------------
# pure-JAX reference (for a sanity check)
# ----------------------------------------------------------------------------
def up_forward_ref(x1, x2, params):
    N, C, h, w = x1.shape
    uh = _bilinear_matrix(2 * h, h)
    uw = _bilinear_matrix(2 * w, w)
    x1u = jnp.einsum("oh,pw,nchw->ncop", uh, uw, x1)
    dy = x2.shape[2] - x1u.shape[2]
    dx = x2.shape[3] - x1u.shape[3]
    x1u = jnp.pad(x1u, ((0, 0), (0, 0),
                        (dy // 2, dy - dy // 2),
                        (dx // 2, dx - dx // 2)))
    x = jnp.concatenate([x2, x1u], axis=1)

    def cbr(x, wgt, scale, shift):
        y = jax.lax.conv_general_dilated(
            x, wgt, window_strides=(1, 1), padding="SAME",
            dimension_numbers=("NCHW", "OIHW", "NCHW"))
        y = y * scale[None, :, None, None] + shift[None, :, None, None]
        return jnp.maximum(y, 0.0)

    x = cbr(x, params["w1"], params["scale1"], params["shift1"])
    x = cbr(x, params["w2"], params["scale2"], params["shift2"])
    return x


# ----------------------------------------------------------------------------
# main
# ----------------------------------------------------------------------------
if __name__ == "__main__":
    key = jax.random.PRNGKey(0)
    k1, k2, k3, k4 = jax.random.split(key, 4)

    # Up(in_channels=8, out_channels=4, bilinear=True)
    in_channels, out_channels = 8, 4
    mid_channels = in_channels // 2                     # 4
    N, H2, W2 = 2, 16, 16

    # UNet convention: x1 (deep feature, half spatial) and x2 (skip) each carry
    # in_channels // 2 channels; after concat we have in_channels.
    x1 = jax.random.normal(k1, (N, in_channels // 2, H2 // 2, W2 // 2), jnp.float32)
    x2 = jax.random.normal(k2, (N, in_channels // 2, H2, W2), jnp.float32)

    # Conv weights in PyTorch OIHW layout; BN folded to scale/shift.
    w1 = 0.1 * jax.random.normal(k3, (mid_channels, in_channels, 3, 3), jnp.float32)
    w2 = 0.1 * jax.random.normal(k4, (out_channels, mid_channels, 3, 3), jnp.float32)

    eps = 1e-5
    g1 = 1.0 + 0.10 * jnp.arange(mid_channels, dtype=jnp.float32)
    b1 = 0.05 * jnp.arange(mid_channels, dtype=jnp.float32)
    m1 = 0.01 * jnp.arange(mid_channels, dtype=jnp.float32)
    v1 = 1.0 + 0.02 * jnp.arange(mid_channels, dtype=jnp.float32)
    g2 = 1.0 + 0.07 * jnp.arange(out_channels, dtype=jnp.float32)
    b2 = -0.03 * jnp.arange(out_channels, dtype=jnp.float32)
    m2 = 0.02 * jnp.arange(out_channels, dtype=jnp.float32)
    v2 = 1.0 + 0.03 * jnp.arange(out_channels, dtype=jnp.float32)

    scale1 = g1 / jnp.sqrt(v1 + eps)
    shift1 = b1 - m1 * scale1
    scale2 = g2 / jnp.sqrt(v2 + eps)
    shift2 = b2 - m2 * scale2

    params = dict(w1=w1, scale1=scale1, shift1=shift1,
                  w2=w2, scale2=scale2, shift2=shift2)

    out = up_forward(x1, x2, params)
    out = jax.block_until_ready(out)

    ref = up_forward_ref(x1, x2, params)
    assert out.shape == (N, out_channels, H2, W2), out.shape
    err = float(jnp.max(jnp.abs(out - ref)))
    assert jnp.allclose(out, ref, atol=2e-4, rtol=2e-4), err

    print("KERNEL_OK")
</pallas_src>

<mosaic_0001>
module attributes {stable_mosaic.version = 11 : i64} {
  func.func @_up_fused_kernel(%arg0: i32, %arg1: memref<1x4x64xf32, #tpu.memory_space<vmem>>, %arg2: memref<1x4x256xf32, #tpu.memory_space<vmem>>, %arg3: memref<64x256xf32, #tpu.memory_space<vmem>>, %arg4: memref<3x3x4x8xf32, #tpu.memory_space<vmem>>, %arg5: memref<4x1xf32, #tpu.memory_space<vmem>>, %arg6: memref<3x3x4x4xf32, #tpu.memory_space<vmem>>, %arg7: memref<4x1xf32, #tpu.memory_space<vmem>>, %arg8: memref<1x4x256xf32, #tpu.memory_space<vmem>>, %arg9: memref<8x512xf32, #tpu.memory_space<vmem>>) attributes {dimension_semantics = [#tpu.dimension_semantics<parallel>], iteration_bounds = array<i64: 2>, scalar_prefetch = 0 : i64, scratch_operands = 1 : i64, tpu.core_type = #tpu.core_type<tc>, window_params = [{transform_indices = @transform_0, window_bounds = array<i64: 1, 4, 64>}, {transform_indices = @transform_1, window_bounds = array<i64: 1, 4, 256>}, {pipeline_mode = #tpu.pipeline_mode<synchronous>, transform_indices = @transform_2, window_bounds = array<i64: 64, 256>}, {pipeline_mode = #tpu.pipeline_mode<synchronous>, transform_indices = @transform_3, window_bounds = array<i64: 3, 3, 4, 8>}, {pipeline_mode = #tpu.pipeline_mode<synchronous>, transform_indices = @transform_4, window_bounds = array<i64: 4, 1>}, {pipeline_mode = #tpu.pipeline_mode<synchronous>, transform_indices = @transform_5, window_bounds = array<i64: 3, 3, 4, 4>}, {pipeline_mode = #tpu.pipeline_mode<synchronous>, transform_indices = @transform_6, window_bounds = array<i64: 4, 1>}, {transform_indices = @transform_7, window_bounds = array<i64: 1, 4, 256>}]} {
    %cst = arith.constant 0.000000e+00 : f32
    %0 = vector.broadcast %cst : f32 to vector<8x512xf32>
    %c0 = arith.constant 0 : index
    %c0_0 = arith.constant 0 : index
    %1 = vector.load %arg9[%c0, %c0_0] : memref<8x512xf32, #tpu.memory_space<vmem>>, vector<8x512xf32>
    tpu.vector_store %arg9[%c0, %c0_0], %0 {strides = array<i32>} : memref<8x512xf32, #tpu.memory_space<vmem>>, vector<8x512xf32>,
    %c0_1 = arith.constant 0 : index
    %c0_2 = arith.constant 0 : index
    %c0_3 = arith.constant 0 : index
    %2 = vector.load %arg1[%c0_1, %c0_2, %c0_3] : memref<1x4x64xf32, #tpu.memory_space<vmem>>, vector<1x4x64xf32>
    %3 = vector.shape_cast %2 : vector<1x4x64xf32> to vector<4x64xf32>
    %c0_4 = arith.constant 0 : index
    %c0_5 = arith.constant 0 : index
    %4 = vector.load %arg3[%c0_4, %c0_5] : memref<64x256xf32, #tpu.memory_space<vmem>>, vector<64x256xf32>
    %cst_6 = arith.constant dense<0.000000e+00> : vector<4x256xf32>
    %5 = tpu.matmul %3, %4, %cst_6 {dimension_numbers = #tpu.dot_dimension_numbers<[1], [0], [0], [1], [0, 0, 1, 1], [], []>} : vector<4x64xf32>, vector<64x256xf32>, vector<4x256xf32> -> vector<4x256xf32>
    %c0_7 = arith.constant 0 : index
    %c0_8 = arith.constant 0 : index
    %c0_9 = arith.constant 0 : index
    %6 = vector.load %arg2[%c0_7, %c0_8, %c0_9] : memref<1x4x256xf32, #tpu.memory_space<vmem>>, vector<1x4x256xf32>
    %7 = vector.shape_cast %6 : vector<1x4x256xf32> to vector<4x256xf32>
    %c0_10 = arith.constant 0 : index
    %c128 = arith.constant 128 : index
    %8 = vector.load %arg9[%c0_10, %c128] : memref<8x512xf32, #tpu.memory_space<vmem>>, vector<4x256xf32>
    tpu.vector_store %arg9[%c0_10, %c128], %7 {strides = array<i32>} : memref<8x512xf32, #tpu.memory_space<vmem>>, vector<4x256xf32>,
    %c4 = arith.constant 4 : index
    %c128_11 = arith.constant 128 : index
    %9 = vector.load %arg9[%c4, %c128_11] : memref<8x512xf32, #tpu.memory_space<vmem>>, vector<4x256xf32>
    tpu.vector_store %arg9[%c4, %c128_11], %5 {strides = array<i32>} : memref<8x512xf32, #tpu.memory_space<vmem>>, vector<4x256xf32>,
    %10 = tpu.iota {dimensions = array<i32: 1>} : vector<1x256xi32>
    %c16_i32 = arith.constant 16 : i32
    %c0_i32 = arith.constant 0 : i32
    %11 = arith.cmpi eq, %c16_i32, %c0_i32 : i32
    %c1_i32 = arith.constant 1 : i32
    %12 = arith.select %11, %c1_i32, %c16_i32 : i32
    %13 = vector.broadcast %12 : i32 to vector<1x256xi32>
    %14 = arith.remsi %10, %13 : vector<1x256xi32>
    %c0_i32_12 = arith.constant 0 : i32
    %15 = vector.broadcast %c0_i32_12 : i32 to vector<1x256xi32>
    %16 = arith.cmpi ne, %14, %15 : vector<1x256xi32>
    %c0_i32_13 = arith.constant 0 : i32
    %17 = vector.broadcast %c0_i32_13 : i32 to vector<1x256xi32>
    %18 = arith.cmpi slt, %14, %17 : vector<1x256xi32>
    %c0_i32_14 = arith.constant 0 : i32
    %19 = arith.cmpi slt, %12, %c0_i32_14 : i32
    %20 = vector.broadcast %19 : i1 to vector<1x256xi1>
    %21 = vector.broadcast %20 : vector<1x256xi1> to vector<1x256xi1>
    %22 = arith.xori %18, %21 : vector<1x256xi1>
    %23 = arith.andi %22, %16 : vector<1x256xi1>
    %24 = vector.broadcast %12 : i32 to vector<1x256xi32>
    %25 = arith.addi %14, %24 : vector<1x256xi32>
    %26 = arith.select %23, %25, %14 : vector<1x256xi1>, vector<1x256xi32>
    %c0_i32_15 = arith.constant 0 : i32
    %27 = vector.broadcast %c0_i32_15 : i32 to vector<1x256xi32>
    %28 = arith.cmpi sgt, %26, %27 : vector<1x256xi32>
    %c15_i32 = arith.constant 15 : i32
    %29 = vector.broadcast %c15_i32 : i32 to vector<1x256xi32>
    %30 = arith.cmpi slt, %26, %29 : vector<1x256xi32>
    %c0_16 = arith.constant 0 : index
    %c0_17 = arith.constant 0 : index
    %31 = vector.load %arg5[%c0_16, %c0_17] : memref<4x1xf32, #tpu.memory_space<vmem>>, vector<4x1xf32>
    %32 = vector.shape_cast %31 : vector<4x1xf32> to vector<4x1xf32>
    %33 = vector.broadcast %32 : vector<4x1xf32> to vector<4x256xf32>
    %c0_18 = arith.constant 0 : index
    %c111 = arith.constant 111 : index
    %34 = vector.load %arg9[%c0_18, %c111] : memref<8x512xf32, #tpu.memory_space<vmem>>, vector<8x256xf32>
    %c0_19 = arith.constant 0 : index
    %c0_20 = arith.constant 0 : index
    %c0_21 = arith.constant 0 : index
    %c0_22 = arith.constant 0 : index
    %35 = vector.load %arg4[%c0_19, %c0_20, %c0_21, %c0_22] : memref<3x3x4x8xf32, #tpu.memory_space<vmem>>, vector<1x1x4x8xf32>
    %36 = vector.shape_cast %35 : vector<1x1x4x8xf32> to vector<4x8xf32>
    %cst_23 = arith.constant dense<0.000000e+00> : vector<4x256xf32>
    %37 = tpu.matmul %36, %34, %cst_23 {dimension_numbers = #tpu.dot_dimension_numbers<[1], [0], [0], [1], [0, 0, 1, 1], [], []>} : vector<4x8xf32>, vector<8x256xf32>, vector<4x256xf32> -> vector<4x256xf32>
    %cst_24 = arith.constant 0.000000e+00 : f32
    %38 = vector.shape_cast %28 : vector<1x256xi1> to vector<1x256xi1>
    %39 = vector.broadcast %38 : vector<1x256xi1> to vector<4x256xi1>
    %40 = vector.broadcast %cst_24 : f32 to vector<4x256xf32>
    %41 = arith.select %39, %37, %40 : vector<4x256xi1>, vector<4x256xf32>
    %42 = arith.addf %33, %41 : vector<4x256xf32>
    %c0_25 = arith.constant 0 : index
    %c112 = arith.constant 112 : index
    %43 = vector.load %arg9[%c0_25, %c112] : memref<8x512xf32, #tpu.memory_space<vmem>>, vector<8x256xf32>
    %c0_26 = arith.constant 0 : index
    %c1 = arith.constant 1 : index
    %c0_27 = arith.constant 0 : index
    %c0_28 = arith.constant 0 : index
    %44 = vector.load %arg4[%c0_26, %c1, %c0_27, %c0_28] : memref<3x3x4x8xf32, #tpu.memory_space<vmem>>, vector<1x1x4x8xf32>
    %45 = vector.shape_cast %44 : vector<1x1x4x8xf32> to vector<4x8xf32>
    %cst_29 = arith.constant dense<0.000000e+00> : vector<4x256xf32>
    %46 = tpu.matmul %45, %43, %cst_29 {dimension_numbers = #tpu.dot_dimension_numbers<[1], [0], [0], [1], [0, 0, 1, 1], [], []>} : vector<4x8xf32>, vector<8x256xf32>, vector<4x256xf32> -> vector<4x256xf32>
    %47 = arith.addf %42, %46 : vector<4x256xf32>
    %c0_30 = arith.constant 0 : index
    %c113 = arith.constant 113 : index
    %48 = vector.load %arg9[%c0_30, %c113] : memref<8x512xf32, #tpu.memory_space<vmem>>, vector<8x256xf32>
    %c0_31 = arith.constant 0 : index
    %c2 = arith.constant 2 : index
    %c0_32 = arith.constant 0 : index
    %c0_33 = arith.constant 0 : index
    %49 = vector.load %arg4[%c0_31, %c2, %c0_32, %c0_33] : memref<3x3x4x8xf32, #tpu.memory_space<vmem>>, vector<1x1x4x8xf32>
    %50 = vector.shape_cast %49 : vector<1x1x4x8xf32> to vector<4x8xf32>
    %cst_34 = arith.constant dense<0.000000e+00> : vector<4x256xf32>
    %51 = tpu.matmul %50, %48, %cst_34 {dimension_numbers = #tpu.dot_dimension_numbers<[1], [0], [0], [1], [0, 0, 1, 1], [], []>} : vector<4x8xf32>, vector<8x256xf32>, vector<4x256xf32> -> vector<4x256xf32>
    %cst_35 = arith.constant 0.000000e+00 : f32
    %52 = vector.shape_cast %30 : vector<1x256xi1> to vector<1x256xi1>
    %53 = vector.broadcast %52 : vector<1x256xi1> to vector<4x256xi1>
    %54 = vector.broadcast %cst_35 : f32 to vector<4x256xf32>
    %55 = arith.select %53, %51, %54 : vector<4x256xi1>, vector<4x256xf32>
    %56 = arith.addf %47, %55 : vector<4x256xf32>
    %c0_36 = arith.constant 0 : index
    %c127 = arith.constant 127 : index
    %57 = vector.load %arg9[%c0_36, %c127] : memref<8x512xf32, #tpu.memory_space<vmem>>, vector<8x256xf32>
    %c1_37 = arith.constant 1 : index
    %c0_38 = arith.constant 0 : index
    %c0_39 = arith.constant 0 : index
    %c0_40 = arith.constant 0 : index
    %58 = vector.load %arg4[%c1_37, %c0_38, %c0_39, %c0_40] : memref<3x3x4x8xf32, #tpu.memory_space<vmem>>, vector<1x1x4x8xf32>
    %59 = vector.shape_cast %58 : vector<1x1x4x8xf32> to vector<4x8xf32>
    %cst_41 = arith.constant dense<0.000000e+00> : vector<4x256xf32>
    %60 = tpu.matmul %59, %57, %cst_41 {dimension_numbers = #tpu.dot_dimension_numbers<[1], [0], [0], [1], [0, 0, 1, 1], [], []>} : vector<4x8xf32>, vector<8x256xf32>, vector<4x256xf32> -> vector<4x256xf32>
    %cst_42 = arith.constant 0.000000e+00 : f32
    %61 = vector.shape_cast %28 : vector<1x256xi1> to vector<1x256xi1>
    %62 = vector.broadcast %61 : vector<1x256xi1> to vector<4x256xi1>
    %63 = vector.broadcast %cst_42 : f32 to vector<4x256xf32>
    %64 = arith.select %62, %60, %63 : vector<4x256xi1>, vector<4x256xf32>
    %65 = arith.addf %56, %64 : vector<4x256xf32>
    %c0_43 = arith.constant 0 : index
    %c128_44 = arith.constant 128 : index
    %66 = vector.load %arg9[%c0_43, %c128_44] : memref<8x512xf32, #tpu.memory_space<vmem>>, vector<8x256xf32>
    %c1_45 = arith.constant 1 : index
    %c1_46 = arith.constant 1 : index
    %c0_47 = arith.constant 0 : index
    %c0_48 = arith.constant 0 : index
    %67 = vector.load %arg4[%c1_45, %c1_46, %c0_47, %c0_48] : memref<3x3x4x8xf32, #tpu.memory_space<vmem>>, vector<1x1x4x8xf32>
    %68 = vector.shape_cast %67 : vector<1x1x4x8xf32> to vector<4x8xf32>
    %cst_49 = arith.constant dense<0.000000e+00> : vector<4x256xf32>
    %69 = tpu.matmul %68, %66, %cst_49 {dimension_numbers = #tpu.dot_dimension_numbers<[1], [0], [0], [1], [0, 0, 1, 1], [], []>} : vector<4x8xf32>, vector<8x256xf32>, vector<4x256xf32> -> vector<4x256xf32>
    %70 = arith.addf %65, %69 : vector<4x256xf32>
    %c0_50 = arith.constant 0 : index
    %c129 = arith.constant 129 : index
    %71 = vector.load %arg9[%c0_50, %c129] : memref<8x512xf32, #tpu.memory_space<vmem>>, vector<8x256xf32>
    %c1_51 = arith.constant 1 : index
    %c2_52 = arith.constant 2 : index
    %c0_53 = arith.constant 0 : index
    %c0_54 = arith.constant 0 : index
    %72 = vector.load %arg4[%c1_51, %c2_52, %c0_53, %c0_54] : memref<3x3x4x8xf32, #tpu.memory_space<vmem>>, vector<1x1x4x8xf32>
    %73 = vector.shape_cast %72 : vector<1x1x4x8xf32> to vector<4x8xf32>
    %cst_55 = arith.constant dense<0.000000e+00> : vector<4x256xf32>
    %74 = tpu.matmul %73, %71, %cst_55 {dimension_numbers = #tpu.dot_dimension_numbers<[1], [0], [0], [1], [0, 0, 1, 1], [], []>} : vector<4x8xf32>, vector<8x256xf32>, vector<4x256xf32> -> vector<4x256xf32>
    %cst_56 = arith.constant 0.000000e+00 : f32
    %75 = vector.shape_cast %30 : vector<1x256xi1> to vector<1x256xi1>
    %76 = vector.broadcast %75 : vector<1x256xi1> to vector<4x256xi1>
    %77 = vector.broadcast %cst_56 : f32 to vector<4x256xf32>
    %78 = arith.select %76, %74, %77 : vector<4x256xi1>, vector<4x256xf32>
    %79 = arith.addf %70, %78 : vector<4x256xf32>
    %c0_57 = arith.constant 0 : index
    %c143 = arith.constant 143 : index
    %80 = vector.load %arg9[%c0_57, %c143] : memref<8x512xf32, #tpu.memory_space<vmem>>, vector<8x256xf32>
    %c2_58 = arith.constant 2 : index
    %c0_59 = arith.constant 0 : index
    %c0_60 = arith.constant 0 : index
    %c0_61 = arith.constant 0 : index
    %81 = vector.load %arg4[%c2_58, %c0_59, %c0_60, %c0_61] : memref<3x3x4x8xf32, #tpu.memory_space<vmem>>, vector<1x1x4x8xf32>
    %82 = vector.shape_cast %81 : vector<1x1x4x8xf32> to vector<4x8xf32>
    %cst_62 = arith.constant dense<0.000000e+00> : vector<4x256xf32>
    %83 = tpu.matmul %82, %80, %cst_62 {dimension_numbers = #tpu.dot_dimension_numbers<[1], [0], [0], [1], [0, 0, 1, 1], [], []>} : vector<4x8xf32>, vector<8x256xf32>, vector<4x256xf32> -> vector<4x256xf32>
    %cst_63 = arith.constant 0.000000e+00 : f32
    %84 = vector.shape_cast %28 : vector<1x256xi1> to vector<1x256xi1>
    %85 = vector.broadcast %84 : vector<1x256xi1> to vector<4x256xi1>
    %86 = vector.broadcast %cst_63 : f32 to vector<4x256xf32>
    %87 = arith.select %85, %83, %86 : vector<4x256xi1>, vector<4x256xf32>
    %88 = arith.addf %79, %87 : vector<4x256xf32>
    %c0_64 = arith.constant 0 : index
    %c144 = arith.constant 144 : index
    %89 = vector.load %arg9[%c0_64, %c144] : memref<8x512xf32, #tpu.memory_space<vmem>>, vector<8x256xf32>
    %c2_65 = arith.constant 2 : index
    %c1_66 = arith.constant 1 : index
    %c0_67 = arith.constant 0 : index
    %c0_68 = arith.constant 0 : index
    %90 = vector.load %arg4[%c2_65, %c1_66, %c0_67, %c0_68] : memref<3x3x4x8xf32, #tpu.memory_space<vmem>>, vector<1x1x4x8xf32>
    %91 = vector.shape_cast %90 : vector<1x1x4x8xf32> to vector<4x8xf32>
    %cst_69 = arith.constant dense<0.000000e+00> : vector<4x256xf32>
    %92 = tpu.matmul %91, %89, %cst_69 {dimension_numbers = #tpu.dot_dimension_numbers<[1], [0], [0], [1], [0, 0, 1, 1], [], []>} : vector<4x8xf32>, vector<8x256xf32>, vector<4x256xf32> -> vector<4x256xf32>
    %93 = arith.addf %88, %92 : vector<4x256xf32>
    %c0_70 = arith.constant 0 : index
    %c145 = arith.constant 145 : index
    %94 = vector.load %arg9[%c0_70, %c145] : memref<8x512xf32, #tpu.memory_space<vmem>>, vector<8x256xf32>
    %c2_71 = arith.constant 2 : index
    %c2_72 = arith.constant 2 : index
    %c0_73 = arith.constant 0 : index
    %c0_74 = arith.constant 0 : index
    %95 = vector.load %arg4[%c2_71, %c2_72, %c0_73, %c0_74] : memref<3x3x4x8xf32, #tpu.memory_space<vmem>>, vector<1x1x4x8xf32>
    %96 = vector.shape_cast %95 : vector<1x1x4x8xf32> to vector<4x8xf32>
    %cst_75 = arith.constant dense<0.000000e+00> : vector<4x256xf32>
    %97 = tpu.matmul %96, %94, %cst_75 {dimension_numbers = #tpu.dot_dimension_numbers<[1], [0], [0], [1], [0, 0, 1, 1], [], []>} : vector<4x8xf32>, vector<8x256xf32>, vector<4x256xf32> -> vector<4x256xf32>
    %cst_76 = arith.constant 0.000000e+00 : f32
    %98 = vector.shape_cast %30 : vector<1x256xi1> to vector<1x256xi1>
    %99 = vector.broadcast %98 : vector<1x256xi1> to vector<4x256xi1>
    %100 = vector.broadcast %cst_76 : f32 to vector<4x256xf32>
    %101 = arith.select %99, %97, %100 : vector<4x256xi1>, vector<4x256xf32>
    %102 = arith.addf %93, %101 : vector<4x256xf32>
    %cst_77 = arith.constant 0.000000e+00 : f32
    %103 = vector.broadcast %cst_77 : f32 to vector<4x256xf32>
    %104 = arith.maximumf %102, %103 : vector<4x256xf32>
    %c0_78 = arith.constant 0 : index
    %c128_79 = arith.constant 128 : index
    %105 = vector.load %arg9[%c0_78, %c128_79] : memref<8x512xf32, #tpu.memory_space<vmem>>, vector<4x256xf32>
    tpu.vector_store %arg9[%c0_78, %c128_79], %104 {strides = array<i32>} : memref<8x512xf32, #tpu.memory_space<vmem>>, vector<4x256xf32>,
    %c0_80 = arith.constant 0 : index
    %c0_81 = arith.constant 0 : index
    %106 = vector.load %arg7[%c0_80, %c0_81] : memref<4x1xf32, #tpu.memory_space<vmem>>, vector<4x1xf32>
    %107 = vector.shape_cast %106 : vector<4x1xf32> to vector<4x1xf32>
    %108 = vector.broadcast %107 : vector<4x1xf32> to vector<4x256xf32>
    %c0_82 = arith.constant 0 : index
    %c111_83 = arith.constant 111 : index
    %109 = vector.load %arg9[%c0_82, %c111_83] : memref<8x512xf32, #tpu.memory_space<vmem>>, vector<4x256xf32>
    %c0_84 = arith.constant 0 : index
    %c0_85 = arith.constant 0 : index
    %c0_86 = arith.constant 0 : index
    %c0_87 = arith.constant 0 : index
    %110 = vector.load %arg6[%c0_84, %c0_85, %c0_86, %c0_87] : memref<3x3x4x4xf32, #tpu.memory_space<vmem>>, vector<1x1x4x4xf32>
    %111 = vector.shape_cast %110 : vector<1x1x4x4xf32> to vector<4x4xf32>
    %cst_88 = arith.constant dense<0.000000e+00> : vector<4x256xf32>
    %112 = tpu.matmul %111, %109, %cst_88 {dimension_numbers = #tpu.dot_dimension_numbers<[1], [0], [0], [1], [0, 0, 1, 1], [], []>} : vector<4x4xf32>, vector<4x256xf32>, vector<4x256xf32> -> vector<4x256xf32>
    %cst_89 = arith.constant 0.000000e+00 : f32
    %113 = vector.shape_cast %28 : vector<1x256xi1> to vector<1x256xi1>
    %114 = vector.broadcast %113 : vector<1x256xi1> to vector<4x256xi1>
    %115 = vector.broadcast %cst_89 : f32 to vector<4x256xf32>
    %116 = arith.select %114, %112, %115 : vector<4x256xi1>, vector<4x256xf32>
    %117 = arith.addf %108, %116 : vector<4x256xf32>
    %c0_90 = arith.constant 0 : index
    %c112_91 = arith.constant 112 : index
    %118 = vector.load %arg9[%c0_90, %c112_91] : memref<8x512xf32, #tpu.memory_space<vmem>>, vector<4x256xf32>
    %c0_92 = arith.constant 0 : index
    %c1_93 = arith.constant 1 : index
    %c0_94 = arith.constant 0 : index
    %c0_95 = arith.constant 0 : index
    %119 = vector.load %arg6[%c0_92, %c1_93, %c0_94, %c0_95] : memref<3x3x4x4xf32, #tpu.memory_space<vmem>>, vector<1x1x4x4xf32>
    %120 = vector.shape_cast %119 : vector<1x1x4x4xf32> to vector<4x4xf32>
    %cst_96 = arith.constant dense<0.000000e+00> : vector<4x256xf32>
    %121 = tpu.matmul %120, %118, %cst_96 {dimension_numbers = #tpu.dot_dimension_numbers<[1], [0], [0], [1], [0, 0, 1, 1], [], []>} : vector<4x4xf32>, vector<4x256xf32>, vector<4x256xf32> -> vector<4x256xf32>
    %122 = arith.addf %117, %121 : vector<4x256xf32>
    %c0_97 = arith.constant 0 : index
    %c113_98 = arith.constant 113 : index
    %123 = vector.load %arg9[%c0_97, %c113_98] : memref<8x512xf32, #tpu.memory_space<vmem>>, vector<4x256xf32>
    %c0_99 = arith.constant 0 : index
    %c2_100 = arith.constant 2 : index
    %c0_101 = arith.constant 0 : index
    %c0_102 = arith.constant 0 : index
    %124 = vector.load %arg6[%c0_99, %c2_100, %c0_101, %c0_102] : memref<3x3x4x4xf32, #tpu.memory_space<vmem>>, vector<1x1x4x4xf32>
    %125 = vector.shape_cast %124 : vector<1x1x4x4xf32> to vector<4x4xf32>
    %cst_103 = arith.constant dense<0.000000e+00> : vector<4x256xf32>
    %126 = tpu.matmul %125, %123, %cst_103 {dimension_numbers = #tpu.dot_dimension_numbers<[1], [0], [0], [1], [0, 0, 1, 1], [], []>} : vector<4x4xf32>, vector<4x256xf32>, vector<4x256xf32> -> vector<4x256xf32>
    %cst_104 = arith.constant 0.000000e+00 : f32
    %127 = vector.shape_cast %30 : vector<1x256xi1> to vector<1x256xi1>
    %128 = vector.broadcast %127 : vector<1x256xi1> to vector<4x256xi1>
    %129 = vector.broadcast %cst_104 : f32 to vector<4x256xf32>
    %130 = arith.select %128, %126, %129 : vector<4x256xi1>, vector<4x256xf32>
    %131 = arith.addf %122, %130 : vector<4x256xf32>
    %c0_105 = arith.constant 0 : index
    %c127_106 = arith.constant 127 : index
    %132 = vector.load %arg9[%c0_105, %c127_106] : memref<8x512xf32, #tpu.memory_space<vmem>>, vector<4x256xf32>
    %c1_107 = arith.constant 1 : index
    %c0_108 = arith.constant 0 : index
    %c0_109 = arith.constant 0 : index
    %c0_110 = arith.constant 0 : index
    %133 = vector.load %arg6[%c1_107, %c0_108, %c0_109, %c0_110] : memref<3x3x4x4xf32, #tpu.memory_space<vmem>>, vector<1x1x4x4xf32>
    %134 = vector.shape_cast %133 : vector<1x1x4x4xf32> to vector<4x4xf32>
    %cst_111 = arith.constant dense<0.000000e+00> : vector<4x256xf32>
    %135 = tpu.matmul %134, %132, %cst_111 {dimension_numbers = #tpu.dot_dimension_numbers<[1], [0], [0], [1], [0, 0, 1, 1], [], []>} : vector<4x4xf32>, vector<4x256xf32>, vector<4x256xf32> -> vector<4x256xf32>
    %cst_112 = arith.constant 0.000000e+00 : f32
    %136 = vector.shape_cast %28 : vector<1x256xi1> to vector<1x256xi1>
    %137 = vector.broadcast %136 : vector<1x256xi1> to vector<4x256xi1>
    %138 = vector.broadcast %cst_112 : f32 to vector<4x256xf32>
    %139 = arith.select %137, %135, %138 : vector<4x256xi1>, vector<4x256xf32>
    %140 = arith.addf %131, %139 : vector<4x256xf32>
    %c0_113 = arith.constant 0 : index
    %c128_114 = arith.constant 128 : index
    %141 = vector.load %arg9[%c0_113, %c128_114] : memref<8x512xf32, #tpu.memory_space<vmem>>, vector<4x256xf32>
    %c1_115 = arith.constant 1 : index
    %c1_116 = arith.constant 1 : index
    %c0_117 = arith.constant 0 : index
    %c0_118 = arith.constant 0 : index
    %142 = vector.load %arg6[%c1_115, %c1_116, %c0_117, %c0_118] : memref<3x3x4x4xf32, #tpu.memory_space<vmem>>, vector<1x1x4x4xf32>
    %143 = vector.shape_cast %142 : vector<1x1x4x4xf32> to vector<4x4xf32>
    %cst_119 = arith.constant dense<0.000000e+00> : vector<4x256xf32>
    %144 = tpu.matmul %143, %141, %cst_119 {dimension_numbers = #tpu.dot_dimension_numbers<[1], [0], [0], [1], [0, 0, 1, 1], [], []>} : vector<4x4xf32>, vector<4x256xf32>, vector<4x256xf32> -> vector<4x256xf32>
    %145 = arith.addf %140, %144 : vector<4x256xf32>
    %c0_120 = arith.constant 0 : index
    %c129_121 = arith.constant 129 : index
    %146 = vector.load %arg9[%c0_120, %c129_121] : memref<8x512xf32, #tpu.memory_space<vmem>>, vector<4x256xf32>
    %c1_122 = arith.constant 1 : index
    %c2_123 = arith.constant 2 : index
    %c0_124 = arith.constant 0 : index
    %c0_125 = arith.constant 0 : index
    %147 = vector.load %arg6[%c1_122, %c2_123, %c0_124, %c0_125] : memref<3x3x4x4xf32, #tpu.memory_space<vmem>>, vector<1x1x4x4xf32>
    %148 = vector.shape_cast %147 : vector<1x1x4x4xf32> to vector<4x4xf32>
    %cst_126 = arith.constant dense<0.000000e+00> : vector<4x256xf32>
    %149 = tpu.matmul %148, %146, %cst_126 {dimension_numbers = #tpu.dot_dimension_numbers<[1], [0], [0], [1], [0, 0, 1, 1], [], []>} : vector<4x4xf32>, vector<4x256xf32>, vector<4x256xf32> -> vector<4x256xf32>
    %cst_127 = arith.constant 0.000000e+00 : f32
    %150 = vector.shape_cast %30 : vector<1x256xi1> to vector<1x256xi1>
    %151 = vector.broadcast %150 : vector<1x256xi1> to vector<4x256xi1>
    %152 = vector.broadcast %cst_127 : f32 to vector<4x256xf32>
    %153 = arith.select %151, %149, %152 : vector<4x256xi1>, vector<4x256xf32>
    %154 = arith.addf %145, %153 : vector<4x256xf32>
    %c0_128 = arith.constant 0 : index
    %c143_129 = arith.constant 143 : index
    %155 = vector.load %arg9[%c0_128, %c143_129] : memref<8x512xf32, #tpu.memory_space<vmem>>, vector<4x256xf32>
    %c2_130 = arith.constant 2 : index
    %c0_131 = arith.constant 0 : index
    %c0_132 = arith.constant 0 : index
    %c0_133 = arith.constant 0 : index
    %156 = vector.load %arg6[%c2_130, %c0_131, %c0_132, %c0_133] : memref<3x3x4x4xf32, #tpu.memory_space<vmem>>, vector<1x1x4x4xf32>
    %157 = vector.shape_cast %156 : vector<1x1x4x4xf32> to vector<4x4xf32>
    %cst_134 = arith.constant dense<0.000000e+00> : vector<4x256xf32>
    %158 = tpu.matmul %157, %155, %cst_134 {dimension_numbers = #tpu.dot_dimension_numbers<[1], [0], [0], [1], [0, 0, 1, 1], [], []>} : vector<4x4xf32>, vector<4x256xf32>, vector<4x256xf32> -> vector<4x256xf32>
    %cst_135 = arith.constant 0.000000e+00 : f32
    %159 = vector.shape_cast %28 : vector<1x256xi1> to vector<1x256xi1>
    %160 = vector.broadcast %159 : vector<1x256xi1> to vector<4x256xi1>
    %161 = vector.broadcast %cst_135 : f32 to vector<4x256xf32>
    %162 = arith.select %160, %158, %161 : vector<4x256xi1>, vector<4x256xf32>
    %163 = arith.addf %154, %162 : vector<4x256xf32>
    %c0_136 = arith.constant 0 : index
    %c144_137 = arith.constant 144 : index
    %164 = vector.load %arg9[%c0_136, %c144_137] : memref<8x512xf32, #tpu.memory_space<vmem>>, vector<4x256xf32>
    %c2_138 = arith.constant 2 : index
    %c1_139 = arith.constant 1 : index
    %c0_140 = arith.constant 0 : index
    %c0_141 = arith.constant 0 : index
    %165 = vector.load %arg6[%c2_138, %c1_139, %c0_140, %c0_141] : memref<3x3x4x4xf32, #tpu.memory_space<vmem>>, vector<1x1x4x4xf32>
    %166 = vector.shape_cast %165 : vector<1x1x4x4xf32> to vector<4x4xf32>
    %cst_142 = arith.constant dense<0.000000e+00> : vector<4x256xf32>
    %167 = tpu.matmul %166, %164, %cst_142 {dimension_numbers = #tpu.dot_dimension_numbers<[1], [0], [0], [1], [0, 0, 1, 1], [], []>} : vector<4x4xf32>, vector<4x256xf32>, vector<4x256xf32> -> vector<4x256xf32>
    %168 = arith.addf %163, %167 : vector<4x256xf32>
    %c0_143 = arith.constant 0 : index
    %c145_144 = arith.constant 145 : index
    %169 = vector.load %arg9[%c0_143, %c145_144] : memref<8x512xf32, #tpu.memory_space<vmem>>, vector<4x256xf32>
    %c2_145 = arith.constant 2 : index
    %c2_146 = arith.constant 2 : index
    %c0_147 = arith.constant 0 : index
    %c0_148 = arith.constant 0 : index
    %170 = vector.load %arg6[%c2_145, %c2_146, %c0_147, %c0_148] : memref<3x3x4x4xf32, #tpu.memory_space<vmem>>, vector<1x1x4x4xf32>
    %171 = vector.shape_cast %170 : vector<1x1x4x4xf32> to vector<4x4xf32>
    %cst_149 = arith.constant dense<0.000000e+00> : vector<4x256xf32>
    %172 = tpu.matmul %171, %169, %cst_149 {dimension_numbers = #tpu.dot_dimension_numbers<[1], [0], [0], [1], [0, 0, 1, 1], [], []>} : vector<4x4xf32>, vector<4x256xf32>, vector<4x256xf32> -> vector<4x256xf32>
    %cst_150 = arith.constant 0.000000e+00 : f32
    %173 = vector.shape_cast %30 : vector<1x256xi1> to vector<1x256xi1>
    %174 = vector.broadcast %173 : vector<1x256xi1> to vector<4x256xi1>
    %175 = vector.broadcast %cst_150 : f32 to vector<4x256xf32>
    %176 = arith.select %174, %172, %175 : vector<4x256xi1>, vector<4x256xf32>
    %177 = arith.addf %168, %176 : vector<4x256xf32>
    %cst_151 = arith.constant 0.000000e+00 : f32
    %178 = vector.broadcast %cst_151 : f32 to vector<4x256xf32>
    %179 = arith.maximumf %177, %178 : vector<4x256xf32>
    %c0_152 = arith.constant 0 : index
    %c0_153 = arith.constant 0 : index
    %c0_154 = arith.constant 0 : index
    %180 = vector.load %arg8[%c0_152, %c0_153, %c0_154] : memref<1x4x256xf32, #tpu.memory_space<vmem>>, vector<1x4x256xf32>
    %181 = vector.shape_cast %180 : vector<1x4x256xf32> to vector<4x256xf32>
    %182 = vector.shape_cast %179 : vector<4x256xf32> to vector<1x4x256xf32>
    tpu.vector_store %arg8[%c0_152, %c0_153, %c0_154], %182 {strides = array<i32>} : memref<1x4x256xf32, #tpu.memory_space<vmem>>, vector<1x4x256xf32>,
    return
  }
  func.func @transform_0(%arg0: i32) -> (i32, i32, i32) {
    %c0_i32 = arith.constant 0 : i32
    %c0_i32_0 = arith.constant 0 : i32
    %c0_i32_1 = arith.constant 0 : i32
    return %arg0, %c0_i32, %c0_i32_0 : i32, i32, i32
  }
  func.func @transform_1(%arg0: i32) -> (i32, i32, i32) {
    %c0_i32 = arith.constant 0 : i32
    %c0_i32_0 = arith.constant 0 : i32
    %c0_i32_1 = arith.constant 0 : i32
    return %arg0, %c0_i32, %c0_i32_0 : i32, i32, i32
  }
  func.func @transform_2(%arg0: i32) -> (i32, i32) {
    %c0_i32 = arith.constant 0 : i32
    %c0_i32_0 = arith.constant 0 : i32
    %c0_i32_1 = arith.constant 0 : i32
    return %c0_i32, %c0_i32_0 : i32, i32
  }
  func.func @transform_3(%arg0: i32) -> (i32, i32, i32, i32) {
    %c0_i32 = arith.constant 0 : i32
    %c0_i32_0 = arith.constant 0 : i32
    %c0_i32_1 = arith.constant 0 : i32
    %c0_i32_2 = arith.constant 0 : i32
    %c0_i32_3 = arith.constant 0 : i32
    return %c0_i32, %c0_i32_0, %c0_i32_1, %c0_i32_2 : i32, i32, i32, i32
  }
  func.func @transform_4(%arg0: i32) -> (i32, i32) {
    %c0_i32 = arith.constant 0 : i32
    %c0_i32_0 = arith.constant 0 : i32
    %c0_i32_1 = arith.constant 0 : i32
    return %c0_i32, %c0_i32_0 : i32, i32
  }
  func.func @transform_5(%arg0: i32) -> (i32, i32, i32, i32) {
    %c0_i32 = arith.constant 0 : i32
    %c0_i32_0 = arith.constant 0 : i32
    %c0_i32_1 = arith.constant 0 : i32
    %c0_i32_2 = arith.constant 0 : i32
    %c0_i32_3 = arith.constant 0 : i32
    return %c0_i32, %c0_i32_0, %c0_i32_1, %c0_i32_2 : i32, i32, i32, i32
  }
  func.func @transform_6(%arg0: i32) -> (i32, i32) {
    %c0_i32 = arith.constant 0 : i32
    %c0_i32_0 = arith.constant 0 : i32
    %c0_i32_1 = arith.constant 0 : i32
    return %c0_i32, %c0_i32_0 : i32, i32
  }
  func.func @transform_7(%arg0: i32) -> (i32, i32, i32) {
    %c0_i32 = arith.constant 0 : i32
    %c0_i32_0 = arith.constant 0 : i32
    %c0_i32_1 = arith.constant 0 : i32
    return %arg0, %c0_i32, %c0_i32_0 : i32, i32, i32
  }
}

</mosaic_0001>

<bundles_post_ra>
// kernel: tpu_custom_call.1
= control target key start
LH: loop header
LB: loop body
LE: loop exit
PB: predicated region body
PF: predicated region fallthrough
CT: control target
= control target key end

     0   :  { %s2586_s0 = inlined_call_operand.vmem [shape: f32[2,4,64], index: 0, kind: input, shape index: {}]   ;;  %s2587_s1 = inlined_call_operand.hbm [shape: f32[2,4,256], index: 1, kind: input, shape index: {}]   ;;  %s2588_s2 = inlined_call_operand.hbm [shape: f32[64,256], index: 2, kind: input, shape index: {}]   ;;  %s2589_s3 = inlined_call_operand.hbm [shape: f32[3,3,4,8], index: 3, kind: input, shape index: {}]   ;;  %s2590_s4 = inlined_call_operand.vmem [shape: f32[4,1], index: 4, kind: input, shape index: {}]   ;;  %s2591_s5 = inlined_call_operand.hbm [shape: f32[3,3,4,4], index: 5, kind: input, shape index: {}]   ;;  %s2592_s6 = inlined_call_operand.vmem [shape: f32[4,1], index: 6, kind: input, shape index: {}]   ;;  %s2593_s7 = inlined_call_operand.hbm [shape: f32[2,4,256], index: 7, kind: output, shape index: {}]  }
   0x1   :  { %2594 = sst [smem:[#allocation16_spill]] %s2588_s2 }
   0x2   :  { %12 = vsyncpa [#allocation4], 0 }
   0x3   :  { %14 = vsyncpa [#allocation4 + $0x1], 0 }
   0x4   :  { %15 = vsyncpa [#allocation7], 0 }
   0x5   :  { %16 = vsyncpa [#allocation10], 0 }
   0x6   :  { %17 = vsyncpa [#allocation5], 0 }
   0x7   :  { %19 = vsyncpa [#allocation5 + $0x1], 0  ;;  %s2186_s24 = smov 0   ;;  %s2188_s25 = smov 0  }
   0x8   :  { %s2190_s26 = smov 0   ;;  %s2192_s27 = smov 0  }
   0x9 LB: > { %s2595_s2 = sld [smem:[#allocation16_spill]]  ;;  %s2210_s8 = sadd.s32 4294967295, %s2127_s27   ;;  %s2127_s27 = sphi %s2192_s27, %s2614_s27   ;;  %s2123_s26 = sphi %s2190_s26, %s2613_s26   ;;  %s2119_s25 = sphi %s2188_s25, %s2612_s25   ;;  %s2115_s24 = sphi %s2186_s24, %s2611_s24  }
   0xa   : > { %p1721_p0 = scmp.ge.s32.totalorder %s2127_s27, 1  ;;  %p72_p1 = scmp.eq.s32.totalorder %s2210_s8, 0 }
   0xb   : > { %p213_p2 = scmp.lt.s32.totalorder %s2127_s27, 3  ;;  %s2129_s10 = smov [#allocation6]  }
   0xc   : > { %s226_s11 = sshll.u32 %s2129_s10, 4  ;;  %s238_s14 = sshll.u32 %s2589_s3, 4  ;;  %s227_s11 = int_to_ptr.vmem [resolvable:$true] %s226_s11  ;;  %s239_s14 = int_to_ptr.hbm [resolvable:$true] %s238_s14 }
   0xd   : > { %p2215_p3 = pnand %p1721_p0, %p213_p2  ;;  %s2130_s16 = smov [#allocation8]  }
   0xe   : > { %s240_s17 = sshll.u32 %s2130_s16, 4  ;;  %s2131_s18 = smov 256   ;;  %s241_s17 = int_to_ptr.vmem [resolvable:$true] %s240_s17 }
   0xf   : > { %s224_s30 = sshll.u32 %s2595_s2, 4  ;;  %p1815_p4 = pneg %p2215_p3  ;;  %s225_s30 = int_to_ptr.hbm [resolvable:$true] %s224_s30 }
  0x10   : > { %s2132_s19 = smov 16   ;;  %s2133_s20 = smov 64  }
  0x11   : > { %p2227_p6 = pnand %p1815_p4, %p72_p1  ;;  %s2134_s21 = smov 4  }
  0x12   : > { %s255_s28 = sshll.u32 %s2591_s5, 4  ;;  %s2135_s29 = smov [#allocation9]   ;;  %s256_s28 = int_to_ptr.hbm [resolvable:$true] %s255_s28 }
  0x13   : > { %1818 = dma.hbm_to_vmem [thread:$0]  (!%p2227_p6), %s225_s30, 2048, %s227_s11, [#allocation7], %s2131_s18, %s2131_s18, %s2132_s19  }
  0x14   : > { %1821 = dma.hbm_to_vmem [thread:$0]  (!%p2227_p6), %s239_s14, 576, %s241_s17, [#allocation7], %s2133_s20, %s2133_s20, %s2134_s21  }
  0x15   : > { %s257_s10 = sshll.u32 %s2135_s29, 4  ;;  %s1720_s30 = sadd.s32 4294967294, %s2127_s27   ;;  %s258_s10 = int_to_ptr.vmem [resolvable:$true] %s257_s10 }
  0x16   : > { %1824 = dma.hbm_to_vmem [thread:$0]  (!%p2227_p6), %s256_s28, 576, %s258_s10, [#allocation10], %s2133_s20, %s2133_s20, %s2134_s21  }
  0x17   : > { %s2242_s11 = sadd.s32 1, %s2127_s27   ;;  %s58_s12 = sadd.s32 1, %s2123_s26 }
  0x18   : > { %s55_s13 = ssub.s32 %s2127_s27, %s2242_s11  ;;  %p65_p7 = scmp.ne.s32.totalorder %s2123_s26, %s2119_s25 }
  0x19   : > { %p56_p8 = scmp.eq.s32.totalorder %s55_s13, 0  ;;  %p66_p9 = scmp.eq.s32.totalorder %s2127_s27, 0 }
  0x1a   : > { %p71_p10 = scmp.ne.s32.totalorder %s2119_s25, %s2115_s24  ;;  %p200_p11 = scmp.eq.s32.totalorder %s2210_s8, 1 }
  0x1b   : > { %s2254_s14 = scalar_select %p56_p8, %s2123_s26, %s58_s12  }
  0x1c   : > { %p2258_p12 = por %p72_p1, %p71_p10  ;;  %p2262_p13 = por %p200_p11, %p65_p7 }
  0x1d   : > { %p206_p0 = scmp.eq.s32.totalorder %s1720_s30, 1  ;;  %p67_p2 = por %p66_p9, %p65_p7 }
  0x1e   : > { %s281_s17 = sand.u32 1, %s2123_s26   ;;  %p1836_p6 = scmp.lt.s32.totalorder %s2127_s27, 2 }
  0x1f   : > { %p2267_p4 = por %p206_p0, %p71_p10  ;;  %s1726_s19 = sshll.u32 %s281_s17, 3 }
  0x20   : > { %s1797_s20 = sshll.u32 %s2127_s27, 3  ;;  %s285_s29 = scalar_lea.vmem [#allocation3], %s1726_s19 }
  0x21   : > { %s290_s23 = scalar_lea.hbm %s2587_s1, %s1797_s20  ;;  %s294_s10 = sshll.u32 %s285_s29, 4  ;;  %s295_s10 = int_to_ptr.vmem [resolvable:$true] %s294_s10 }
  0x22   : > { %s292_s28 = sshll.u32 %s290_s23, 4  ;;  %p2276_p8 = pnand %p1836_p6, %p67_p2  ;;  %s293_s28 = int_to_ptr.hbm [resolvable:$true] %s292_s28 }
  0x23   : > { %s282_s12 = scalar_lea.sflag [#allocation4], %s281_s17  ;;  %s2023_s13 = sshra.s32 %s293_s28, 4  ;;  %s2024_s13 = int_to_ptr.hbm [resolvable:$true] %s2023_s13 }
  0x24   : > { %s2025_s2 = scalar_lea.hbm %s2024_s13, 8  ;;  %p2027_p9 = pneg %p2276_p8 }
  0x25   : > { %p2026_p7 = scmp.ne.s32.totalorder %s2024_s13, %s2025_s2  ;;  %s2030_s19 = scalar_lea.hbm %s2587_s1, 16 }
  0x26   : > { %p2031_p0 = scmp.lt.s32.totalorder %s2024_s13, %s2587_s1  ;;  %p2032_p2 = scmp.lt.s32.totalorder %s2030_s19, %s2025_s2 }
  0x27   : > { %p2028_p10 = pnand %p2027_p9, %p2026_p7 }
  0x28   : > { %p2033_p6 = por %p2032_p2, %p2031_p0 }
  0x29   : > { %p2029_p11 = pneg %p2028_p10 }
  0x2b   : > { %p2034_p5 = pnand %p2033_p6, %p2029_p11 }
  0x2d   : > { %2037 = shalt.err (!%p2034_p5)
}
  0x2e   : > { %1828 = dma.hbm_to_vmem [thread:$0]  (!%p2276_p8), %s293_s28, 128, %s295_s10, %s282_s12  }
  0x2f   : > { %303 = sbr.rel (%p2215_p3) target bundleno = 809 (0x329), region = 48  ;;  %s2293_s17 = sand.u32 (!%p2215_p3), 1, %s2119_s25  }
  0x30   : > { %s1730_s29 = sshll.u32 (!%p2215_p3), %s2293_s17, 3  ;;  %s306_s20 = scalar_lea.sflag (!%p2215_p3), [#allocation4], %s2293_s17 }
  0x31   : > { %s2299_s2 = scalar_lea.vmem (!%p2215_p3), [#allocation3], %s1730_s29 }
  0x34   : > { %2098 = dma.done.wait (%p2258_p12), %s306_s20, 128  }
  0x35   : > { %2100 = vsyncadd (%p2258_p12), %s306_s20, 4294967168 }
  0x36   : > { %2102 = dma.done.wait (%p72_p1), [#allocation7], 2624  }
  0x37   : > { %2104 = vsyncadd (%p72_p1), [#allocation7], 4294964672 }
  0x38   : > { %2106 = dma.done.wait (%p72_p1), [#allocation10], 576  }
  0x39   : > { %2108 = vsyncadd (%p72_p1), [#allocation10], 4294966720  ;;  %v2136_v0 = vmov 0.0   ;;  %p360_p3 = scmp.lt.s32.totalorder %s2210_s8, 1  ;;  %v383_v1 = vld [vmem:[#allocation6 + $0x70] sm:$0xff]  ;;  %v384_v2 = vld [vmem:[#allocation6 + $0x78] sm:$0xff] }
  0x3a   : > { %364 = vst [vmem:[#allocation2 + $0x10] sm:$0xff] %v2136_v0  ;;  %v381_v3 = vld [vmem:[#allocation6 + $0x60] sm:$0xff]  ;;  %397 = vmatpush.msra.mxu0 %v383_v1  ;;  %417 = vmatpush.msra.mxu1 %v384_v2  ;;  %v382_v4 = vld [vmem:[#allocation6 + $0x68] sm:$0xff]  ;;  %v379_v5 = vld [vmem:[#allocation6 + $0x50] sm:$0xff]  ;;  %vm385_vm0 = vcmask 523264   ;;  %s2137_s12 = smov 15  }
  0x3b   : > { %365 = vst [vmem:[#allocation2] sm:$0xff] %v2136_v0  ;;  %v380_v6 = vld [vmem:[#allocation6 + $0x58] sm:$0xff]  ;;  %s361_s9 = scalar_select %p360_p3, %s2210_s8, 1  ;;  %v377_v7 = vld [vmem:[#allocation6 + $0x40] sm:$0xff]  ;;  %v378_v8 = vld [vmem:[#allocation6 + $0x48] sm:$0xff]  ;;  %v2145_v31 = vmov 0  }
  0x3c   : > { %367 = vst [vmem:[#allocation2 + $0x8] sm:$0xff] %v2136_v0  ;;  %398 = vmatpush.msra.mxu0 %v381_v3  ;;  %418 = vmatpush.msra.mxu1 %v382_v4  ;;  %v375_v9 = vld [vmem:[#allocation6 + $0x30] sm:$0xff]  ;;  %v376_v10 = vld [vmem:[#allocation6 + $0x38] sm:$0xff]  ;;  %v373_v11 = vld [vmem:[#allocation6 + $0x20] sm:$0xff]  ;;  %s2138_s13 = smov 16   ;;  %s2139_s21 = smov 17  }
  0x3d   : > { %366 = vst [vmem:[#allocation2 + $0x18] sm:$0xff] %v2136_v0  ;;  %s1735_s15 = sshll.u32 %s361_s9, 2  ;;  %v374_v12 = vld [vmem:[#allocation6 + $0x28] sm:$0xff]  ;;  %v371_v13 = vld [vmem:[#allocation6 + $0x10] sm:$0xff]  ;;  %v372_v14 = vld [vmem:[#allocation6 + $0x18] sm:$0xff]  ;;  %s2140_s19 = smov 113   ;;  %1930 = vset.pattern.permute.xlu1 %v2145_v31  ;;  %1931 = vset.pattern.permute.xlu2 %v2145_v31 }
  0x3e   : > { %399 = vmatpush.msra.mxu0 %v379_v5  ;;  %419 = vmatpush.msra.mxu1 %v380_v6  ;;  %s363_s30 = scalar_lea.vmem %s2586_s0, %s1735_s15  ;;  %v369_v15 = vld [vmem:[#allocation6] sm:$0xff]  ;;  %v370_v16 = vld [vmem:[#allocation6 + $0x8] sm:$0xff]  ;;  %v429_v18 = vld [vmem:[%s2299_s2] sm:$0xff]  ;;  %s2141_s22 = smov 1   ;;  %vm496_vm1 = vcmask 138240   ;;  %vm561_vm2 = vcmask 130048  }
  0x3f   : > { %v368_v17 = vld [vmem:[%s363_s30] sm:$0xf]  ;;  %431 = vst [vmem:[#allocation1] ss:$2 sm:$0xff] %v429_v18  ;;  %s2142_s23 = smov 127   ;;  %s2143_s20 = smov 112   ;;  %1932 = vset.pattern.permute.xlu0 %v2145_v31 }
  0x40   : > { %400 = vmatpush.msra.mxu0 %v377_v7  ;;  %420 = vmatpush.msra.mxu1 %v378_v8  ;;  %s2144_s2 = smov 111   ;;  %v477_v30 = vld [vmem:[%s2590_s4] sm:$0xf]  ;;  %v486_v41 = vld [vmem:[#allocation8] sm:$0xf]  ;;  %vm501_vm3 = vcmask 64512  }
  0x41   : > { %vm619_vm4 = vcmask 121856   ;;  %v554_v50 = vld [vmem:[#allocation8 + $0x4] sm:$0xf]  ;;  %vm856_vm5 = vcmask 924672   ;;  %v612_v57 = vld [vmem:[#allocation8 + $0x8] sm:$0xf] }
  0x42   : > { %401 = vmatpush.msra.mxu0 %v375_v9  ;;  %421 = vmatpush.msra.mxu1 %v376_v10  ;;  %vm683_vm6 = vcmask 7168   ;;  %vm796_vm7 = vcmask 1039360   ;;  %v676_v4 = vld [vmem:[#allocation8 + $0xc] sm:$0xf]  ;;  %vm916_vm8 = vcmask 916480   ;;  %vm974_vm9 = vcmask 908288  }
  0x43   : > { %v736_v8 = vld [vmem:[#allocation8 + $0x10] sm:$0xf]  ;;  %vm1055_vm14 = vcmask 1043456   ;;  %vm1051_vm15 = vcmask 31744   ;;  %s1798_s30 = sshll.u32 %s2210_s8, 3  ;;  %s359_s8 = scalar_lea.vmem [#allocation11], %s1730_s29 }
  0x44   : > { %402 = vmatpush.msra.mxu0 %v373_v11  ;;  %422 = vmatpush.msra.mxu1 %v374_v12  ;;  %s2073_s29 = scalar_lea.hbm %s2593_s7, 16 }
  0x46   : > { %403 = vmatpush.msra.mxu0 %v371_v13  ;;  %423 = vmatpush.msra.mxu1 %v372_v14  ;;  %v432_v19 = vld.sshfl [vmem:[#allocation1] sm:$0xff pattern:$0x75316420]  ;;  %v433_v20 = vld.sshfl [vmem:[#allocation1 + $0x8] sm:$0xff pattern:$0x75316420] }
  0x47   : > { %436 = vst [vmem:[#allocation2] sm:$0xf] %v432_v19  ;;  %v849_v19 = vld [vmem:[#allocation8 + $0x18] sm:$0xf] }
  0x48   : > { %404 = vmatpush.msra.mxu0 %v369_v15  ;;  %424 = vmatpush.msra.mxu1 %v370_v16  ;;  %437 = vst [vmem:[#allocation2 + $0x18] sm:$0xf] %v433_v20  ;;  %v786_v16 = vld [vmem:[#allocation8 + $0x14] sm:$0xf] }
  0x49   : > { %1736 = vmatmul.msk.f32.vlgmr.msra.gmra.mxu0 %vm385_vm0, %v368_v17  ;;  %1737 = vmatmul.msk.f32.vlgmr.msra.gmra.mxu1 %vm385_vm0, %v368_v17 }
  0xc6   : > { %v406_v21 = vpop.f32.mrf.mxu0  ;;  %v426_v22 = vpop.f32.mrf.mxu1 }
  0xc7   : > { %v440_v23 = vrot.slane %v406_v21, 4  ;;  %v441_v24 = vrot.slane %v426_v22, 4  ;;  %v909_v22 = vld [vmem:[#allocation8 + $0x1c] sm:$0xf] }
  0xc9   : > { %444 = vst [vmem:[#allocation2] sm:$0xf0] %v440_v23  ;;  %v967_v23 = vld [vmem:[#allocation8 + $0x20] sm:$0xf] }
  0xca   : > { %445 = vst [vmem:[#allocation2 + $0x18] sm:$0xf0] %v441_v24  ;;  %v1036_v24 = vld [vmem:[#allocation2 + $0x10] sm:$0xf] }
  0xd0   : > { %v2323_v25 = vld [vmem:[#allocation2] sm:$0xff] }
  0xd1   : > { %v1900_v26 = vpack.i.bf16 %v2323_v25, %v2136_v0  ;;  %v2330_v27 = vld [vmem:[#allocation2 + $0x18] sm:$0xff] }
  0xd2   : > { %v1910_v28 = vpack.i.bf16 %v2330_v27, %v2323_v25 }
  0xd3   : > { %1901 = vrot.lane.b32.xlu2 %v1900_v26, %s2137_s12  ;;  %1896 = vrot.lane.b32.xlu1 %v1900_v26, %s2138_s13 }
  0xd4   : > { %1891 = vrot.lane.b32.xlu0 %v1900_v26, %s2139_s21 }
  0xdb   : > { %617 = vrot.lane.b32.xlu2 %v2330_v27, %s2137_s12  ;;  %559 = vrot.lane.b32.xlu1 %v2330_v27, %s2138_s13 }
  0xdc   : > { %494 = vrot.lane.b32.xlu0 %v2330_v27, %s2139_s21 }
  0xe3   : > { %1911 = vrot.lane.b32.xlu2 %v1910_v28, %s2140_s19  ;;  %681 = vrot.lane.b32.xlu1 %v2330_v27, %s2141_s22 }
  0xe4   : > { %854 = vrot.lane.b32.xlu0 %v2136_v0, %s2140_s19 }
  0xeb   : > { %794 = vrot.lane.b32.xlu2 %v2136_v0, %s2142_s23  ;;  %1916 = vrot.lane.b32.xlu1 %v1910_v28, %s2142_s23 }
  0xec   : > { %1906 = vrot.lane.b32.xlu0 %v1900_v26, %s2141_s22  ;;  %v446_v26 = vlaneseq }
  0xf3   : > { %1926 = vrot.lane.b32.xlu2 %v1910_v28, %s2143_s20  ;;  %972 = vrot.lane.b32.xlu1 %v2136_v0, %s2144_s2 }
  0xf4   : > { %1921 = vrot.lane.b32.xlu0 %v1910_v28, %s2144_s2  ;;  %v447_v28 = vand.u32 127, %v446_v26 }
  0xf6   : > { %v448_v31 = vadd.s32 128, %v447_v28 }
  0xfb   : > { %480 = vperm.xlu1 %1930, %v477_v30   ;;  %v453_v30 = vand.u32 15, %v447_v28  ;;  %v1039_v28 = vld [vmem:[#allocation9] sm:$0xf] }
  0xfc   : > { %914 = vrot.lane.b32.xlu0 %v2136_v0, %s2143_s20 }
  0xfd   : > { %vm2398_vm10 = vcmp.gt.s32.totalorder %v453_v30, 0  ;;  %vm2404_vm11 = vcmp.lt.s32.totalorder %v453_v30, 15 }
 0x103   : > { %1106 = vrot.lane.b32.xlu1 %v1036_v24, %s2138_s13 }
 0x104   : > { %1043 = vrot.lane.b32.xlu0 %v1036_v24, %s2139_s21 }
 0x10b   : > { %1226 = vrot.lane.b32.xlu1 %v1036_v24, %s2141_s22 }
 0x10c   : > { %1165 = vrot.lane.b32.xlu0 %v1036_v24, %s2137_s12 }
 0x12d   : > { %v1902_v29 = vpop.permute.xlu2 %1901 }
 0x12e   : > { %v1904_v39 = vunpack.i.h.bf16 %v1902_v29  ;;  %v1903_v40 = vunpack.i.l.bf16 %v1902_v29 }
 0x130   : > { %v620_v45 = vsel %vm619_vm4, %v1903_v40, %v1904_v39 }
 0x135   : > { %v618_v32 = vpop.permute.xlu2 %617 }
 0x136   : > { %v621_v51 = vsel %vm619_vm4, %v1904_v39, %v618_v32 }
 0x13d   : > { %v1912_v42 = vpop.permute.xlu2 %1911 }
 0x13e   : > { %v1914_v55 = vunpack.i.h.bf16 %v1912_v42  ;;  %v1913_v56 = vunpack.i.l.bf16 %v1912_v42 }
 0x140   : > { %v857_v58 = vsel %vm856_vm5, %v1913_v56, %v1914_v55 }
 0x145   : > { %v1897_v33 = vpop.permute.xlu1 %1896  ;;  %v795_v52 = vpop.permute.xlu2 %794 }
 0x146   : > { %v1899_v34 = vunpack.i.h.bf16 %v1897_v33  ;;  %v1898_v35 = vunpack.i.l.bf16 %v1897_v33  ;;  %v1892_v36 = vpop.permute.xlu0 %1891 }
 0x147   : > { %v1894_v37 = vunpack.i.h.bf16 %v1892_v36  ;;  %v1893_v38 = vunpack.i.l.bf16 %v1892_v36 }
 0x148   : > { %v562_v44 = vsel %vm561_vm2, %v1898_v35, %v1899_v34 }
 0x149   : > { %v497_v43 = vsel %vm496_vm1, %v1893_v38, %v1894_v37 }
 0x14a   : > { %520 = vmatpush.msra.mxu2 %v497_v43 }
 0x14b   : > { %1738 = vmatmul.msk.f32.vlgmr.msra.gmra.mxu2 %vm501_vm3, %v486_v41 }
 0x14c   : > { %584 = vmatpush.msrb.mxu2 %v562_v44 }
 0x14d   : > { %v560_v46 = vpop.permute.xlu1 %559  ;;  %v1927_v59 = vpop.permute.xlu2 %1926 }
 0x14e   : > { %642 = vmatpush.msra.mxu2 %v620_v45  ;;  %v495_v47 = vpop.permute.xlu0 %494  ;;  %v563_v49 = vsel %vm561_vm2, %v1899_v34, %v560_v46  ;;  %v1929_v2 = vunpack.i.h.bf16 %v1927_v59  ;;  %v1928_v3 = vunpack.i.l.bf16 %v1927_v59  ;;  %v460_v34 = vand.u32 15, %v448_v31 }
 0x14f   : > { %v498_v48 = vsel %vm496_vm1, %v1894_v37, %v495_v47 }
 0x150   : > { %540 = vmatpush.msra.mxu3 %v498_v48  ;;  %v917_v11 = vsel %vm916_vm8, %v1928_v3, %v1929_v2  ;;  %vm2408_vm12 = vcmp.gt.s32.totalorder %v460_v34, 0  ;;  %vm2420_vm13 = vcmp.lt.s32.totalorder %v460_v34, 15 }
 0x151   : > { %1739 = vmatmul.msk.f32.vlgmr.msra.gmra.mxu3 %vm501_vm3, %v486_v41  ;;  %v2412_v41 = vld [vmem:[#allocation2 + $0x8] sm:$0xf] }
 0x152   : > { %604 = vmatpush.msrb.mxu3 %v563_v49  ;;  %1348 = vrot.lane.b32.xlu0 %v2412_v41, %s2142_s23 }
 0x153   : > { %1740 = vmatmul.msk.f32.vlgmr.msrb.gmra.mxu2 %vm501_vm3, %v554_v50 }
 0x154   : > { %662 = vmatpush.msra.mxu3 %v621_v51  ;;  %755 = vmatpush.msrb.mxu2 %v2323_v25 }
 0x155   : > { %v682_v53 = vpop.permute.xlu1 %681 }
 0x156   : > { %v855_v54 = vpop.permute.xlu0 %854 }
 0x157   : > { %v858_v5 = vsel %vm856_vm5, %v1914_v55, %v855_v54 }
 0x159   : > { %1741 = vmatmul.msk.f32.vlgmr.msrb.gmra.mxu3 %vm501_vm3, %v554_v50 }
 0x15a   : > { %775 = vmatpush.msrb.mxu3 %v2330_v27 }
 0x15b   : > { %1742 = vmatmul.msk.f32.vlgmr.msra.gmra.mxu2 %vm501_vm3, %v612_v57 }
 0x15c   : > { %879 = vmatpush.msra.mxu2 %v857_v58 }
 0x15d   : > { %v1917_v60 = vpop.permute.xlu1 %1916 }
 0x15e   : > { %v1919_v61 = vunpack.i.h.bf16 %v1917_v60  ;;  %v1918_v62 = vunpack.i.l.bf16 %v1917_v60  ;;  %v1907_v63 = vpop.permute.xlu0 %1906 }
 0x15f   : > { %v1909_v0 = vunpack.i.h.bf16 %v1907_v63  ;;  %v1908_v1 = vunpack.i.l.bf16 %v1907_v63 }
 0x160   : > { %v797_v9 = vsel %vm796_vm7, %v1918_v62, %v1919_v61  ;;  %v798_v10 = vsel %vm796_vm7, %v1919_v61, %v795_v52 }
 0x161   : > { %1743 = vmatmul.msk.f32.vlgmr.msra.gmra.mxu3 %vm501_vm3, %v612_v57  ;;  %v684_v6 = vsel %vm683_vm6, %v1908_v1, %v1909_v0  ;;  %v685_v7 = vsel %vm683_vm6, %v1909_v0, %v682_v53 }
 0x162   : > { %899 = vmatpush.msra.mxu3 %v858_v5  ;;  %706 = vmatpush.msrb.mxu0 %v684_v6 }
 0x163   : > { %726 = vmatpush.msrb.mxu1 %v685_v7  ;;  %1744 = vmatmul.msk.f32.vlgmr.msrb.gmra.mxu0 %vm501_vm3, %v676_v4 }
 0x164   : > { %1746 = vmatmul.msk.f32.vlgmr.msrb.gmra.mxu2 %vm501_vm3, %v736_v8  ;;  %819 = vmatpush.msra.mxu0 %v797_v9 }
 0x165   : > { %839 = vmatpush.msra.mxu1 %v798_v10  ;;  %v973_v13 = vpop.permute.xlu1 %972 }
 0x166   : > { %939 = vmatpush.msrb.mxu0 %v917_v11  ;;  %v1922_v12 = vpop.permute.xlu0 %1921  ;;  %1745 = vmatmul.msk.f32.vlgmr.msrb.gmra.mxu1 %vm501_vm3, %v676_v4 }
 0x167   : > { %v1924_v14 = vunpack.i.h.bf16 %v1922_v12  ;;  %v1923_v15 = vunpack.i.l.bf16 %v1922_v12 }
 0x169   : > { %v976_v17 = vsel %vm974_vm9, %v1924_v14, %v973_v13  ;;  %1747 = vmatmul.msk.f32.vlgmr.msrb.gmra.mxu3 %vm501_vm3, %v736_v8  ;;  %v975_v18 = vsel %vm974_vm9, %v1923_v15, %v1924_v14 }
 0x16a   : > { %997 = vmatpush.msrb.mxu2 %v975_v18  ;;  %1017 = vmatpush.msrb.mxu3 %v976_v17 }
 0x16b   : > { %1748 = vmatmul.msk.f32.vlgmr.msra.gmra.mxu0 %vm501_vm3, %v786_v16 }
 0x16c   : > { %1750 = vmatmul.msk.f32.vlgmr.msra.gmra.mxu2 %vm501_vm3, %v849_v19 }
 0x16d   : > { %v481_v37 = vpop.permute.xlu1 %480 }
 0x16e   : > { %v915_v20 = vpop.permute.xlu0 %914  ;;  %1749 = vmatmul.msk.f32.vlgmr.msra.gmra.mxu1 %vm501_vm3, %v786_v16 }
 0x16f   : > { %v918_v21 = vsel %vm916_vm8, %v1929_v2, %v915_v20 }
 0x170   : > { %959 = vmatpush.msrb.mxu1 %v918_v21 }
 0x171   : > { %1751 = vmatmul.msk.f32.vlgmr.msra.gmra.mxu3 %vm501_vm3, %v849_v19 }
 0x173   : > { %1752 = vmatmul.msk.f32.vlgmr.msrb.gmra.mxu0 %vm501_vm3, %v909_v22 }
 0x174   : > { %1754 = vmatmul.msk.f32.vlgmr.msrb.gmra.mxu2 %vm501_vm3, %v967_v23 }
 0x175   : > { %v1107_v30 = vpop.permute.xlu1 %1106 }
 0x176   : > { %1753 = vmatmul.msk.f32.vlgmr.msrb.gmra.mxu1 %vm501_vm3, %v909_v22  ;;  %v1044_v26 = vpop.permute.xlu0 %1043 }
 0x179   : > { %1755 = vmatmul.msk.f32.vlgmr.msrb.gmra.mxu3 %vm501_vm3, %v967_v23 }
 0x17d   : > { %v1227_v34 = vpop.permute.xlu1 %1226 }
 0x1ce   : > { %v522_v25 = vpop.f32.mrf.mxu2 }
 0x1cf   : > { %v549_v36 = vsel %vm2398_vm10, %v522_v25, 0.0 }
 0x1d0   : > { %v551_v42 = vadd.f32 %v549_v36, %v481_v37 }
 0x1d4   : > { %v542_v27 = vpop.f32.mrf.mxu3 }
 0x1d5   : > { %v550_v45 = vsel %vm2408_vm12, %v542_v27, 0.0 }
 0x1d6   : > { %v586_v29 = vpop.f32.mrf.mxu2  ;;  %v552_v51 = vadd.f32 %v550_v45, %v481_v37  ;;  %v1164_v37 = vld [vmem:[#allocation9 + $0x8] sm:$0xf] }
 0x1d7   : > { %v609_v46 = vadd.f32 %v586_v29, %v551_v42 }
 0x1dc   : > { %v606_v32 = vpop.f32.mrf.mxu3 }
 0x1dd   : > { %v610_v54 = vadd.f32 %v606_v32, %v552_v51  ;;  %v1166_v32 = vpop.permute.xlu0 %1165 }
 0x1de   : > { %v644_v35 = vpop.f32.mrf.mxu2 }
 0x1df   : > { %v671_v43 = vsel %vm2404_vm11, %v644_v35, 0.0 }
 0x1e0   : > { %v708_v38 = vpop.f32.mrf.mxu0  ;;  %v673_v49 = vadd.f32 %v671_v43, %v609_v46  ;;  %v1105_v43 = vld [vmem:[#allocation9 + $0x4] sm:$0xf]  ;;  %v1286_v46 = vld [vmem:[#allocation9 + $0x10] sm:$0xf] }
 0x1e1   : > { %v731_v52 = vsel %vm2398_vm10, %v708_v38, 0.0 }
 0x1e2   : > { %v733_v56 = vadd.f32 %v731_v52, %v673_v49  ;;  %v1225_v52 = vld [vmem:[#allocation9 + $0xc] sm:$0xf] }
 0x1e3   : > { %v728_v48 = vpop.f32.mrf.mxu1 }
 0x1e4   : > { %v664_v44 = vpop.f32.mrf.mxu3  ;;  %v732_v59 = vsel %vm2408_vm12, %v728_v48, 0.0 }
 0x1e5   : > { %v672_v53 = vsel %vm2420_vm13, %v664_v44, 0.0  ;;  %v1349_v38 = vpop.permute.xlu0 %1348 }
 0x1e6   : > { %v674_v57 = vadd.f32 %v672_v53, %v610_v54 }
 0x1e7   : > { %v757_v50 = vpop.f32.mrf.mxu2 }
 0x1e8   : > { %v821_v55 = vpop.f32.mrf.mxu0  ;;  %v780_v60 = vadd.f32 %v757_v50, %v733_v56  ;;  %v734_v63 = vadd.f32 %v732_v59, %v674_v57 }
 0x1e9   : > { %v844_v61 = vsel %vm2404_vm11, %v821_v55, 0.0  ;;  %v1030_v55 = vld [vmem:[%s2592_s6] sm:$0xf] }
 0x1ea   : > { %v846_v2 = vadd.f32 %v844_v61, %v780_v60  ;;  %v1340_v60 = vld [vmem:[#allocation9 + $0x14] sm:$0xf] }
 0x1eb   : > { %v841_v0 = vpop.f32.mrf.mxu1 }
 0x1ec   : > { %v777_v58 = vpop.f32.mrf.mxu3  ;;  %v845_v4 = vsel %vm2420_vm13, %v841_v0, 0.0 }
 0x1ed   : > { %v781_v3 = vadd.f32 %v777_v58, %v734_v63 }
 0x1ef   : > { %v881_v62 = vpop.f32.mrf.mxu2  ;;  %v847_v9 = vadd.f32 %v845_v4, %v781_v3 }
 0x1f0   : > { %v904_v1 = vsel %vm2398_vm10, %v881_v62, 0.0  ;;  %v941_v6 = vpop.f32.mrf.mxu0 }
 0x1f1   : > { %v906_v5 = vadd.f32 %v904_v1, %v846_v2  ;;  %v1465_v2 = vld [vmem:[#allocation9 + $0x1c] sm:$0xf] }
 0x1f3   : > { %v964_v10 = vadd.f32 %v941_v6, %v906_v5  ;;  %v961_v15 = vpop.f32.mrf.mxu1  ;;  %v1404_v6 = vld [vmem:[#allocation9 + $0x18] sm:$0xf] }
 0x1f4   : > { %v901_v7 = vpop.f32.mrf.mxu3 }
 0x1f5   : > { %v905_v8 = vsel %vm2408_vm12, %v901_v7, 0.0 }
 0x1f6   : > { %v907_v12 = vadd.f32 %v905_v8, %v847_v9 }
 0x1f7   : > { %v999_v11 = vpop.f32.mrf.mxu2 }
 0x1f8   : > { %v1022_v13 = vsel %vm2404_vm11, %v999_v11, 0.0  ;;  %v965_v17 = vadd.f32 %v961_v15, %v907_v12  ;;  %v1524_v12 = vld [vmem:[#allocation9 + $0x20] sm:$0xf] }
 0x1f9   : > { %v1024_v14 = vadd.f32 %v1022_v13, %v964_v10 }
 0x1fb   : > { %v1026_v16 = vmax.f32 %v1024_v14, 0.0 }
 0x1fc   : > { %v1019_v18 = vpop.f32.mrf.mxu3 }
 0x1fd   : > { %1028 = vst [vmem:[#allocation2] sm:$0xf] %v1026_v16  ;;  %v1023_v19 = vsel %vm2420_vm13, %v1019_v18, 0.0 }
 0x1fe   : > { %v1025_v20 = vadd.f32 %v1023_v19, %v965_v17 }
 0x200   : > { %v1027_v21 = vmax.f32 %v1025_v20, 0.0 }
 0x202   : > { %1029 = vst [vmem:[#allocation2 + $0x18] sm:$0xf] %v1027_v21 }
 0x204   : > { %v1037_v22 = vld [vmem:[#allocation2] sm:$0xf] }
 0x205   : > { %1108 = vrot.lane.b32.xlu1 %v1037_v22, %s2138_s13  ;;  %1045 = vrot.lane.b32.xlu2 %v1037_v22, %s2139_s21  ;;  %v1336_v24 = vld [vmem:[#allocation2] sm:$0xf] }
 0x209   : > { %v2444_v23 = vld [vmem:[#allocation2 + $0x18] sm:$0xf] }
 0x20a   : > { %1047 = vrot.lane.b32.xlu0 %v2444_v23, %s2139_s21  ;;  %v1337_v25 = vld [vmem:[#allocation2 + $0x18] sm:$0xf]  ;;  %s1604_s21 = scalar_lea.hbm %s2593_s7, %s1798_s30 }
 0x20d   : > { %1228 = vrot.lane.b32.xlu1 %v1037_v22, %s2141_s22  ;;  %1110 = vrot.lane.b32.xlu2 %v2444_v23, %s2138_s13 }
 0x212   : > { %1169 = vrot.lane.b32.xlu0 %v2444_v23, %s2137_s12 }
 0x215   : > { %1344 = vrot.lane.b32.xlu1 %v1336_v24, %s2142_s23  ;;  %1167 = vrot.lane.b32.xlu2 %v1037_v22, %s2137_s12 }
 0x21a   : > { %1409 = vrot.lane.b32.xlu0 %v2412_v41, %s2140_s19 }
 0x21d   : > { %1468 = vrot.lane.b32.xlu1 %v1337_v25, %s2143_s20  ;;  %1470 = vrot.lane.b32.xlu2 %v2412_v41, %s2143_s20 }
 0x222   : > { %1405 = vrot.lane.b32.xlu0 %v1336_v24, %s2140_s19 }
 0x225   : > { %1466 = vrot.lane.b32.xlu1 %v1336_v24, %s2143_s20  ;;  %1230 = vrot.lane.b32.xlu2 %v2444_v23, %s2141_s22  ;;  %s1608_s22 = sshll.u32 %s1604_s21, 4  ;;  %s1609_s22 = int_to_ptr.hbm [resolvable:$true] %s1608_s22 }
 0x226   : > { %s2067_s20 = sshra.s32 %s1609_s22, 4  ;;  %s2068_s20 = int_to_ptr.hbm [resolvable:$true] %s2067_s20 }
 0x227   : > { %p2074_p8 = scmp.lt.s32.totalorder %s2068_s20, %s2593_s7 }
 0x22a   : > { %1529 = vrot.lane.b32.xlu0 %v2412_v41, %s2144_s2 }
 0x22d   : > { %1525 = vrot.lane.b32.xlu1 %v1336_v24, %s2144_s2  ;;  %1346 = vrot.lane.b32.xlu2 %v1337_v25, %s2142_s23  ;;  %s1593_s23 = scalar_lea.sflag [#allocation5], %s2293_s17 }
 0x235   : > { %1407 = vrot.lane.b32.xlu2 %v1337_v25, %s2140_s19  ;;  %s1606_s19 = sshll.u32 %s359_s8, 4  ;;  %s1607_s19 = int_to_ptr.vmem [resolvable:$true] %s1606_s19 }
 0x23d   : > { %1527 = vrot.lane.b32.xlu2 %v1337_v25, %s2144_s2  ;;  %s2069_s2 = scalar_lea.hbm %s2068_s20, 8 }
 0x23e   : > { %p2070_p1 = scmp.ne.s32.totalorder %s2068_s20, %s2069_s2  ;;  %p2075_p7 = scmp.lt.s32.totalorder %s2073_s29, %s2069_s2 }
 0x240   : > { %p2071_p5 = pnand %p2070_p1, %p2262_p13  ;;  %p2076_p9 = por %p2075_p7, %p2074_p8 }
 0x242   : > { %p2072_p12 = pneg %p2071_p5 }
 0x244   : > { %p2077_p10 = pnand %p2076_p9, %p2072_p12 }
 0x245   : > { %1033 = vperm.xlu2 %1931, %v1030_v55  }
 0x25f   : > { %v1046_v27 = vpop.permute.xlu2 %1045 }
 0x260   : > { %v1049_v29 = vsel %vm496_vm1, %v1044_v26, %v1046_v27 }
 0x261   : > { %1756 = vmatpush.msk.msra.mxu0 %vm1055_vm14, %v1049_v29 }
 0x262   : > { %1757 = vmatmul.msk.f32.vlgmr.msra.gmra.mxu0 %vm1051_vm15, %v1039_v28 }
 0x267   : > { %v1111_v31 = vpop.permute.xlu2 %1110 }
 0x26f   : > { %v1168_v35 = vpop.permute.xlu2 %1167 }
 0x270   : > { %v1171_v36 = vsel %vm619_vm4, %v1166_v32, %v1168_v35 }
 0x271   : > { %1764 = vmatpush.msk.msrb.mxu0 %vm1055_vm14, %v1171_v36 }
 0x272   : > { %1765 = vmatmul.msk.f32.vlgmr.msrb.gmra.mxu0 %vm1051_vm15, %v1164_v37 }
 0x273   : > { %1772 = vmatpush.msk.msra.mxu0 %vm1055_vm14, %v1037_v22 }
 0x277   : > { %v1109_v41 = vpop.permute.xlu1 %1108  ;;  %v1471_v42 = vpop.permute.xlu2 %1470 }
 0x278   : > { %v1112_v44 = vsel %vm561_vm2, %v1107_v30, %v1109_v41  ;;  %v1113_v45 = vsel %vm561_vm2, %v1109_v41, %v1111_v31 }
 0x279   : > { %1760 = vmatpush.msk.msra.mxu2 %vm1055_vm14, %v1112_v44  ;;  %1762 = vmatpush.msk.msra.mxu3 %vm1055_vm14, %v1113_v45 }
 0x27a   : > { %1763 = vmatmul.msk.f32.vlgmr.msra.gmra.mxu3 %vm1051_vm15, %v1105_v43  ;;  %1761 = vmatmul.msk.f32.vlgmr.msra.gmra.mxu2 %vm1051_vm15, %v1105_v43 }
 0x27b   : > { %1773 = vmatmul.msk.f32.vlgmr.msra.gmra.mxu0 %vm1051_vm15, %v1286_v46 }
 0x27c   : > { %v1048_v48 = vpop.permute.xlu0 %1047 }
 0x27d   : > { %v1050_v49 = vsel %vm496_vm1, %v1046_v27, %v1048_v48 }
 0x27e   : > { %1758 = vmatpush.msk.msra.mxu1 %vm1055_vm14, %v1050_v49 }
 0x27f   : > { %v1229_v50 = vpop.permute.xlu1 %1228  ;;  %v1231_v51 = vpop.permute.xlu2 %1230  ;;  %1759 = vmatmul.msk.f32.vlgmr.msra.gmra.mxu1 %vm1051_vm15, %v1039_v28 }
 0x280   : > { %v1232_v53 = vsel %vm683_vm6, %v1227_v34, %v1229_v50  ;;  %v1233_v54 = vsel %vm683_vm6, %v1229_v50, %v1231_v51 }
 0x281   : > { %1768 = vmatpush.msk.msrb.mxu2 %vm1055_vm14, %v1232_v53  ;;  %1770 = vmatpush.msk.msrb.mxu3 %vm1055_vm14, %v1233_v54 }
 0x282   : > { %1771 = vmatmul.msk.f32.vlgmr.msrb.gmra.mxu3 %vm1051_vm15, %v1225_v52  ;;  %1769 = vmatmul.msk.f32.vlgmr.msrb.gmra.mxu2 %vm1051_vm15, %v1225_v52 }
 0x284   : > { %v1170_v56 = vpop.permute.xlu0 %1169 }
 0x285   : > { %v1172_v57 = vsel %vm619_vm4, %v1168_v35, %v1170_v56 }
 0x286   : > { %1766 = vmatpush.msk.msrb.mxu1 %vm1055_vm14, %v1172_v57 }
 0x287   : > { %v1345_v58 = vpop.permute.xlu1 %1344  ;;  %v1347_v59 = vpop.permute.xlu2 %1346  ;;  %1767 = vmatmul.msk.f32.vlgmr.msrb.gmra.mxu1 %vm1051_vm15, %v1164_v37 }
 0x288   : > { %v1350_v61 = vsel %vm796_vm7, %v1345_v58, %v1347_v59  ;;  %v1351_v62 = vsel %vm796_vm7, %v1347_v59, %v1349_v38  ;;  %1774 = vmatpush.msk.msra.mxu1 %vm1055_vm14, %v2444_v23 }
 0x289   : > { %1776 = vmatpush.msk.msra.mxu2 %vm1055_vm14, %v1350_v61  ;;  %1778 = vmatpush.msk.msra.mxu3 %vm1055_vm14, %v1351_v62 }
 0x28a   : > { %1779 = vmatmul.msk.f32.vlgmr.msra.gmra.mxu3 %vm1051_vm15, %v1340_v60  ;;  %1777 = vmatmul.msk.f32.vlgmr.msra.gmra.mxu2 %vm1051_vm15, %v1340_v60 }
 0x28c   : > { %v1410_v63 = vpop.permute.xlu0 %1409 }
 0x28f   : > { %v1469_v0 = vpop.permute.xlu1 %1468  ;;  %v1408_v1 = vpop.permute.xlu2 %1407  ;;  %1775 = vmatmul.msk.f32.vlgmr.msra.gmra.mxu1 %vm1051_vm15, %v1286_v46 }
 0x290   : > { %v1473_v3 = vsel %vm916_vm8, %v1469_v0, %v1471_v42  ;;  %v1412_v4 = vsel %vm856_vm5, %v1408_v1, %v1410_v63 }
 0x291   : > { %1782 = vmatpush.msk.msrb.mxu1 %vm1055_vm14, %v1412_v4  ;;  %1786 = vmatpush.msk.msrb.mxu3 %vm1055_vm14, %v1473_v3 }
 0x292   : > { %1787 = vmatmul.msk.f32.vlgmr.msrb.gmra.mxu3 %vm1051_vm15, %v1465_v2 }
 0x294   : > { %v1406_v5 = vpop.permute.xlu0 %1405 }
 0x295   : > { %v1411_v7 = vsel %vm856_vm5, %v1406_v5, %v1408_v1 }
 0x296   : > { %1780 = vmatpush.msk.msrb.mxu0 %vm1055_vm14, %v1411_v7 }
 0x297   : > { %v1467_v8 = vpop.permute.xlu1 %1466  ;;  %1781 = vmatmul.msk.f32.vlgmr.msrb.gmra.mxu0 %vm1051_vm15, %v1404_v6  ;;  %1783 = vmatmul.msk.f32.vlgmr.msrb.gmra.mxu1 %vm1051_vm15, %v1404_v6  ;;  %v1528_v10 = vpop.permute.xlu2 %1527 }
 0x298   : > { %v1472_v9 = vsel %vm916_vm8, %v1467_v8, %v1469_v0 }
 0x299   : > { %1784 = vmatpush.msk.msrb.mxu2 %vm1055_vm14, %v1472_v9 }
 0x29a   : > { %1785 = vmatmul.msk.f32.vlgmr.msrb.gmra.mxu2 %vm1051_vm15, %v1465_v2 }
 0x29c   : > { %v1530_v11 = vpop.permute.xlu0 %1529 }
 0x29d   : > { %v1532_v13 = vsel %vm974_vm9, %v1528_v10, %v1530_v11 }
 0x29e   : > { %1790 = vmatpush.msk.msra.mxu1 %vm1055_vm14, %v1532_v13 }
 0x29f   : > { %v1526_v14 = vpop.permute.xlu1 %1525  ;;  %1791 = vmatmul.msk.f32.vlgmr.msra.gmra.mxu1 %vm1051_vm15, %v1524_v12  ;;  %v1034_v21 = vpop.permute.xlu2 %1033 }
 0x2a0   : > { %v1531_v15 = vsel %vm974_vm9, %v1526_v14, %v1528_v10 }
 0x2a1   : > { %1788 = vmatpush.msk.msra.mxu0 %vm1055_vm14, %v1531_v15 }
 0x2a2   : > { %1789 = vmatmul.msk.f32.vlgmr.msra.gmra.mxu0 %vm1051_vm15, %v1524_v12 }
 0x2df   : > { %v1077_v16 = vpop.f32.mrf.mxu0 }
 0x2e0   : > { %v1100_v24 = vsel %vm2398_vm10, %v1077_v16, 0.0 }
 0x2e1   : > { %v1102_v27 = vadd.f32 %v1100_v24, %v1034_v21 }
 0x2ef   : > { %v1197_v22 = vpop.f32.mrf.mxu0 }
 0x2f0   : > { %v1220_v35 = vsel %vm2404_vm11, %v1197_v22, 0.0 }
 0x2f8   : > { %v1311_v37 = vpop.f32.mrf.mxu0 }
 0x2fc   : > { %v1097_v17 = vpop.f32.mrf.mxu1 }
 0x2fd   : > { %v1158_v18 = vpop.f32.mrf.mxu3  ;;  %v1138_v19 = vpop.f32.mrf.mxu2  ;;  %v1101_v20 = vsel %vm2408_vm12, %v1097_v17, 0.0 }
 0x2fe   : > { %v1103_v25 = vadd.f32 %v1101_v20, %v1034_v21  ;;  %v1161_v31 = vadd.f32 %v1138_v19, %v1102_v27 }
 0x300   : > { %v1162_v29 = vadd.f32 %v1158_v18, %v1103_v25  ;;  %v1222_v41 = vadd.f32 %v1220_v35, %v1161_v31 }
 0x304   : > { %v1217_v23 = vpop.f32.mrf.mxu1 }
 0x305   : > { %v1278_v26 = vpop.f32.mrf.mxu3  ;;  %v1221_v28 = vsel %vm2420_vm13, %v1217_v23, 0.0  ;;  %v1258_v30 = vpop.f32.mrf.mxu2 }
 0x306   : > { %v1223_v32 = vadd.f32 %v1221_v28, %v1162_v29  ;;  %v1282_v36 = vsel %vm2408_vm12, %v1278_v26, 0.0  ;;  %v1281_v43 = vsel %vm2398_vm10, %v1258_v30, 0.0 }
 0x307   : > { %v1283_v46 = vadd.f32 %v1281_v43, %v1222_v41 }
 0x308   : > { %v1284_v38 = vadd.f32 %v1282_v36, %v1223_v32 }
 0x309   : > { %v1334_v54 = vadd.f32 %v1311_v37, %v1283_v46 }
 0x30c   : > { %v1331_v34 = vpop.f32.mrf.mxu1 }
 0x30d   : > { %v1396_v42 = vpop.f32.mrf.mxu3  ;;  %v1335_v44 = vadd.f32 %v1331_v34, %v1284_v38  ;;  %v1376_v48 = vpop.f32.mrf.mxu2 }
 0x30e   : > { %v1400_v45 = vsel %vm2420_vm13, %v1396_v42, 0.0  ;;  %v1399_v53 = vsel %vm2404_vm11, %v1376_v48, 0.0 }
 0x30f   : > { %v1402_v51 = vadd.f32 %v1400_v45, %v1335_v44  ;;  %v1401_v58 = vadd.f32 %v1399_v53, %v1334_v54 }
 0x314   : > { %v1457_v49 = vpop.f32.mrf.mxu1  ;;  %v1437_v52 = vpop.f32.mrf.mxu0 }
 0x315   : > { %v1461_v50 = vsel %vm2408_vm12, %v1457_v49, 0.0  ;;  %v1460_v56 = vsel %vm2398_vm10, %v1437_v52, 0.0  ;;  %v1518_v57 = vpop.f32.mrf.mxu3 }
 0x316   : > { %v1463_v55 = vadd.f32 %v1461_v50, %v1402_v51  ;;  %v1462_v59 = vadd.f32 %v1460_v56, %v1401_v58 }
 0x318   : > { %v1522_v60 = vadd.f32 %v1518_v57, %v1463_v55 }
 0x31c   : > { %v1577_v61 = vpop.f32.mrf.mxu1 }
 0x31d   : > { %v1498_v62 = vpop.f32.mrf.mxu2  ;;  %v1581_v40 = vsel %vm2420_vm13, %v1577_v61, 0.0 }
 0x31e   : > { %v1521_v63 = vadd.f32 %v1498_v62, %v1462_v59  ;;  %v1583_v0 = vadd.f32 %v1581_v40, %v1522_v60 }
 0x31f   : > { %v1557_v33 = vpop.f32.mrf.mxu0 }
 0x320   : > { %v1585_v1 = vmax.f32 %v1583_v0, 0.0  ;;  %v1580_v2 = vsel %vm2404_vm11, %v1557_v33, 0.0 }
 0x321   : > { %v1582_v3 = vadd.f32 %v1580_v2, %v1521_v63 }
 0x322   : > { %v1588_v47 = vrot.slane %v1585_v1, 4 }
 0x323   : > { %v1584_v4 = vmax.f32 %v1582_v3, 0.0 }
 0x325   : > { %v1589_v5 = vsel %vm1055_vm14, %v1584_v4, %v1588_v47 }
 0x326   : > { %1591 = vst [vmem:[%s359_s8] sm:$0xff] %v1589_v5 }
 0x327   : > { %2080 = shalt.err (!%p2077_p10)
}
 0x328   : > { %1813 = dma.vmem_to_hbm [thread:$0]  (%p2262_p13), %s1607_s19, 128, %s1609_s22, %s1593_s23  }
 0x329 PF: > { %s1620_s17 = sand.u32 1, %s2115_s24   ;;  %p2610_p11 = scmp.ge.s32.totalorder %s2127_s27, 2 }
 0x32a   : > { %s1621_s30 = scalar_lea.sflag [#allocation5], %s1620_s17 }
 0x32b   : > { %p1830_p0 = pnand %p2610_p11, %p2267_p4 }
 0x32d   : > { %p1831_p2 = pneg %p1830_p0 }
 0x32f   : > { %2110 = dma.done.wait (%p1831_p2), %s1621_s30, 128  }
 0x330   : > { %2112 = vsyncadd (%p1831_p2), %s1621_s30, 4294967168  ;;  %p22_p6 = scmp.ge.s32.totalorder %s2242_s11, 4   ;;  %s2611_s24 = smov %s2119_s25 }
 0x331   : > { %s2612_s25 = smov %s2123_s26  ;;  %s2613_s26 = smov %s2254_s14 }
 0x332   : > { %s2614_s27 = smov %s2242_s11  ;;  %24 = sbr.rel (!%p22_p6) target bundleno = 9 (0x9), region = 124 }
 0x337   :  { %1627 = vsyncpa [#allocation4], 1 }
 0x338   :  { %1629 = vsyncpa [#allocation4 + $0x1], 1 }
 0x339   :  { %1630 = vsyncpa [#allocation7], 1 }
 0x33a   :  { %1631 = vsyncpa [#allocation10], 1 }
 0x33b   :  { %1632 = vsyncpa [#allocation5], 1 }
 0x33c   :  { %1634 = vsyncpa [#allocation5 + $0x1], 1 }

</bundles_post_ra>
